<compile_context>
chip_gen: v7x
topology: tpu7x:2x2x1
jax: 0.10.0
libtpu: 0.0.40
codegen_flags: <defaults>
</compile_context>

<pallas_src>
import numpy as np

import jax
import jax.numpy as jnp
from jax.experimental import pallas as pl
from jax.experimental.pallas import tpu as pltpu


# -----------------------------------------------------------------------------
# Fused encoder kernel
# -----------------------------------------------------------------------------

def _encoder_kernel(x_ref, m1e_ref, m1o_ref, b1_ref,
                    m2e_ref, m2o_ref, b2_ref, wfc_ref, bfc_ref, out_ref):
    # x_ref  : [32, BT, 96]   input image, lane = w*3 + ci, H leading, B sublane
    # m1e/o  : [5, 96, 56]    conv1 band matrices (BN scale folded), per kh,
    #                         even / odd output columns (pre-split for maxpool-W)
    # b1     : [1, 56]        conv1+bn1 bias tiled over lanes (j*4 + co)
    # m2e/o  : [5, 56, 40]    conv2 band matrices over the pooled 14x14x4 map
    # b2     : [1, 40]
    # wfc    : [5, 40, 40]    fused fc_mu|fc_var weights, one slab per pooled h
    # bfc    : [1, 40]
    # out    : [BT, 40]       [:, :20] = mu, [:, 20:] = log_var
    bt = x_ref.shape[1]
    x = x_ref[...]                                            # [32, BT, 96]

    # ---- conv1 (+ folded BN scale): 2 x 5 MXU matmuls ------------------------
    acc_e = jnp.zeros((28 * bt, 56), jnp.float32)
    acc_o = jnp.zeros((28 * bt, 56), jnp.float32)
    for kh in range(5):
        lhs = x[kh:kh + 28].reshape(28 * bt, 96)
        acc_e = acc_e + jnp.dot(lhs, m1e_ref[kh],
                                preferred_element_type=jnp.float32)
        acc_o = acc_o + jnp.dot(lhs, m1o_ref[kh],
                                preferred_element_type=jnp.float32)
    # maxpool over W (even/odd streams), then bias + ReLU (relu/bias commute
    # with the max because the bias is shared per channel and relu is monotone)
    y1 = jnp.maximum(jnp.maximum(acc_e, acc_o) + b1_ref[...], 0.0)
    # maxpool over H: tile-aligned leading-dim split + max
    y1 = y1.reshape(14, 2, bt, 56)
    p1 = jnp.maximum(y1[:, 0], y1[:, 1])                      # [14, BT, 56]

    # ---- conv2 (+ folded BN scale) -------------------------------------------
    acc_e = jnp.zeros((10 * bt, 40), jnp.float32)
    acc_o = jnp.zeros((10 * bt, 40), jnp.float32)
    for kh in range(5):
        lhs = p1[kh:kh + 10].reshape(10 * bt, 56)
        acc_e = acc_e + jnp.dot(lhs, m2e_ref[kh],
                                preferred_element_type=jnp.float32)
        acc_o = acc_o + jnp.dot(lhs, m2o_ref[kh],
                                preferred_element_type=jnp.float32)
    y2 = jnp.maximum(jnp.maximum(acc_e, acc_o) + b2_ref[...], 0.0)
    y2 = y2.reshape(5, 2, bt, 40)
    p2 = jnp.maximum(y2[:, 0], y2[:, 1])                      # [5, BT, 40]

    # ---- fused fc_mu / fc_var --------------------------------------------------
    acc = jnp.zeros((bt, 40), jnp.float32)
    for h in range(5):
        acc = acc + jnp.dot(p2[h], wfc_ref[h],
                            preferred_element_type=jnp.float32)
    out_ref[...] = acc + bfc_ref[...]


# -----------------------------------------------------------------------------
# Parameters
# -----------------------------------------------------------------------------

def init_raw_params(key, latent_dim=20):
    """Deterministic PyTorch-layout parameters (same init as previous version)."""
    ks = jax.random.split(key, 16)

    def u(k, shape, b):
        return jax.random.uniform(k, shape, jnp.float32, -b, b)

    return {
        "w1": u(ks[0], (4, 3, 5, 5), 0.2),
        "b1": u(ks[1], (4,), 0.2),
        "g1": 1.0 + 0.1 * jax.random.normal(ks[2], (4,), jnp.float32),
        "be1": 0.1 * jax.random.normal(ks[3], (4,), jnp.float32),
        "rm1": 0.1 * jax.random.normal(ks[4], (4,), jnp.float32),
        "rv1": 1.0 + 0.1 * jax.random.uniform(ks[5], (4,), jnp.float32),
        "w2": u(ks[6], (8, 4, 5, 5), 0.1),
        "b2": u(ks[7], (8,), 0.1),
        "g2": 1.0 + 0.1 * jax.random.normal(ks[8], (8,), jnp.float32),
        "be2": 0.1 * jax.random.normal(ks[9], (8,), jnp.float32),
        "rm2": 0.1 * jax.random.normal(ks[10], (8,), jnp.float32),
        "rv2": 1.0 + 0.1 * jax.random.uniform(ks[11], (8,), jnp.float32),
        "wmu": u(ks[12], (latent_dim, 200), 0.07),
        "bmu": u(ks[13], (latent_dim,), 0.07),
        "wvar": u(ks[14], (latent_dim, 200), 0.07),
        "bvar": u(ks[15], (latent_dim,), 0.07),
    }


def build_kernel_params(raw, eps=1e-5):
    """Fold eval-mode BN and build the banded MXU weight matrices (init-time)."""
    r = {k: np.asarray(v, np.float32) for k, v in raw.items()}

    s1 = r["g1"] / np.sqrt(r["rv1"] + eps)
    s2 = r["g2"] / np.sqrt(r["rv2"] + eps)
    w1 = r["w1"] * s1[:, None, None, None]           # [4,3,5,5] BN scale folded
    w2 = r["w2"] * s2[:, None, None, None]           # [8,4,5,5]
    bias1 = s1 * (r["b1"] - r["rm1"]) + r["be1"]     # [4]
    bias2 = s2 * (r["b2"] - r["rm2"]) + r["be2"]     # [8]

    # conv1 band matrices: rows = input lane (w_in*3 + ci, w_in < 32),
    # cols = pooled-phase output lane (j*4 + co, j < 14); w_out = 2j + phase.
    m1 = np.zeros((2, 5, 96, 56), np.float32)
    for ph in range(2):
        for kh in range(5):
            for kw in range(5):
                for j in range(14):
                    row = (2 * j + ph + kw) * 3
                    m1[ph, kh, row:row + 3, j * 4:j * 4 + 4] = w1[:, :, kh, kw].T

    # conv2 band matrices over the pooled 14-wide / 4-channel map:
    # rows = j_in*4 + ci (j_in < 14), cols = j*8 + co (j < 5); w_out = 2j + phase.
    m2 = np.zeros((2, 5, 56, 40), np.float32)
    for ph in range(2):
        for kh in range(5):
            for kw in range(5):
                for j in range(5):
                    row = (2 * j + ph + kw) * 4
                    m2[ph, kh, row:row + 4, j * 8:j * 8 + 8] = w2[:, :, kh, kw].T

    # fused [fc_mu ; fc_var], re-indexed from PyTorch's (c,h,w) flatten to the
    # kernel's per-h (w,c) lane order.
    wcat = np.concatenate([r["wmu"], r["wvar"]], axis=0)     # [40, 200]
    wfc = np.zeros((5, 40, 40), np.float32)
    for h in range(5):
        for w in range(5):
            for c in range(8):
                wfc[h, w * 8 + c, :] = wcat[:, c * 25 + h * 5 + w]
    bfc = np.concatenate([r["bmu"], r["bvar"]]).reshape(1, 40)

    return {
        "m1e": jnp.asarray(m1[0]), "m1o": jnp.asarray(m1[1]),
        "b1": jnp.asarray(np.tile(bias1, 14).reshape(1, 56)),
        "m2e": jnp.asarray(m2[0]), "m2o": jnp.asarray(m2[1]),
        "b2": jnp.asarray(np.tile(bias2, 5).reshape(1, 40)),
        "wfc": jnp.asarray(wfc),
        "bfc": jnp.asarray(bfc),
    }


# -----------------------------------------------------------------------------
# Forward wrapper
# -----------------------------------------------------------------------------

def _round_up(x, m):
    return (x + m - 1) // m * m


def encoder_forward(x_nchw, kparams):
    """x_nchw: [B, 3, 32, 32] float -> (mu [B,20], log_var [B,20])."""
    x = x_nchw.astype(jnp.float32)
    B = x.shape[0]
    # Layout glue: NCHW -> [H, B, W*C] so the kernel lane dim is W*C.
    x = jnp.transpose(x, (2, 0, 3, 1)).reshape(32, B, 96)

    b_tile = min(128, _round_up(B, 8))          # batch tile, multiple of 8 rows
    b_pad = _round_up(B, b_tile)
    if b_pad != B:
        x = jnp.pad(x, ((0, 0), (0, b_pad - B), (0, 0)))
    n_tiles = b_pad // b_tile

    out = pl.pallas_call(
        _encoder_kernel,
        grid=(n_tiles,),
        in_specs=[
            pl.BlockSpec((32, b_tile, 96), lambda i: (0, i, 0)),
            pl.BlockSpec((5, 96, 56), lambda i: (0, 0, 0)),
            pl.BlockSpec((5, 96, 56), lambda i: (0, 0, 0)),
            pl.BlockSpec((1, 56), lambda i: (0, 0)),
            pl.BlockSpec((5, 56, 40), lambda i: (0, 0, 0)),
            pl.BlockSpec((5, 56, 40), lambda i: (0, 0, 0)),
            pl.BlockSpec((1, 40), lambda i: (0, 0)),
            pl.BlockSpec((5, 40, 40), lambda i: (0, 0, 0)),
            pl.BlockSpec((1, 40), lambda i: (0, 0)),
        ],
        out_specs=pl.BlockSpec((b_tile, 40), lambda i: (i, 0)),
        out_shape=jax.ShapeDtypeStruct((b_pad, 40), jnp.float32),
        compiler_params=pltpu.CompilerParams(
            dimension_semantics=("parallel",)),
    )(x, kparams["m1e"], kparams["m1o"], kparams["b1"],
      kparams["m2e"], kparams["m2o"], kparams["b2"],
      kparams["wfc"], kparams["bfc"])

    return out[:B, :20], out[:B, 20:]


# -----------------------------------------------------------------------------
# Pure-JAX reference (mirrors the PyTorch module, eval-mode BN)
# -----------------------------------------------------------------------------

def encoder_reference(x_nchw, raw, eps=1e-5):
    def bn(x, g, be, rm, rv):
        s = (1, -1, 1, 1)
        return ((x - rm.reshape(s)) / jnp.sqrt(rv.reshape(s) + eps)
                * g.reshape(s) + be.reshape(s))

    def pool(x):
        return jax.lax.reduce_window(x, -jnp.inf, jax.lax.max,
                                     (1, 1, 2, 2), (1, 1, 2, 2), "VALID")

    hi = jax.lax.Precision.HIGHEST
    x = x_nchw.astype(jnp.float32)
    y = jax.lax.conv_general_dilated(
        x, raw["w1"], (1, 1), "VALID",
        dimension_numbers=("NCHW", "OIHW", "NCHW"), precision=hi)
    y = jnp.maximum(bn(y + raw["b1"].reshape(1, -1, 1, 1),
                       raw["g1"], raw["be1"], raw["rm1"], raw["rv1"]), 0.0)
    y = pool(y)
    y = jax.lax.conv_general_dilated(
        y, raw["w2"], (1, 1), "VALID",
        dimension_numbers=("NCHW", "OIHW", "NCHW"), precision=hi)
    y = jnp.maximum(bn(y + raw["b2"].reshape(1, -1, 1, 1),
                       raw["g2"], raw["be2"], raw["rm2"], raw["rv2"]), 0.0)
    y = pool(y)
    f = y.reshape(y.shape[0], -1)                      # (c, h, w) flatten
    mu = jnp.dot(f, raw["wmu"].T, precision=hi) + raw["bmu"]
    lv = jnp.dot(f, raw["wvar"].T, precision=hi) + raw["bvar"]
    return mu, lv


# -----------------------------------------------------------------------------
# Main
# -----------------------------------------------------------------------------

if __name__ == "__main__":
    key = jax.random.PRNGKey(0)
    kp, kx = jax.random.split(key)
    raw = init_raw_params(kp, latent_dim=20)
    kparams = build_kernel_params(raw)

    # small batch, 3x32x32 input (CIFAR-sized, as implied by the 8*5*5 flatten)
    x = jax.random.normal(kx, (2, 3, 32, 32), jnp.float32)

    fwd = jax.jit(lambda inp: encoder_forward(inp, kparams))
    mu, log_var = fwd(x)
    jax.block_until_ready((mu, log_var))

    assert mu.shape == (2, 20) and log_var.shape == (2, 20)
    assert mu.dtype == jnp.float32 and log_var.dtype == jnp.float32

    ref_mu, ref_lv = encoder_reference(x, raw)
    err = max(float(jnp.max(jnp.abs(mu - ref_mu))),
              float(jnp.max(jnp.abs(log_var - ref_lv))))
    assert err < 5e-2, f"kernel vs reference mismatch: max abs err = {err}"

    print("KERNEL_OK")
</pallas_src>

<mosaic_0001>
module attributes {stable_mosaic.version = 11 : i64} {
  func.func @_encoder_kernel(%arg0: i32, %arg1: memref<32x8x96xf32, #tpu.memory_space<vmem>>, %arg2: memref<5x96x56xf32, #tpu.memory_space<vmem>>, %arg3: memref<5x96x56xf32, #tpu.memory_space<vmem>>, %arg4: memref<1x56xf32, #tpu.memory_space<vmem>>, %arg5: memref<5x56x40xf32, #tpu.memory_space<vmem>>, %arg6: memref<5x56x40xf32, #tpu.memory_space<vmem>>, %arg7: memref<1x40xf32, #tpu.memory_space<vmem>>, %arg8: memref<5x40x40xf32, #tpu.memory_space<vmem>>, %arg9: memref<1x40xf32, #tpu.memory_space<vmem>>, %arg10: memref<8x40xf32, #tpu.memory_space<vmem>>) attributes {dimension_semantics = [#tpu.dimension_semantics<parallel>], iteration_bounds = array<i64: 1>, scalar_prefetch = 0 : i64, scratch_operands = 0 : i64, tpu.core_type = #tpu.core_type<tc>, window_params = [{transform_indices = @transform_0, window_bounds = array<i64: 32, 8, 96>}, {pipeline_mode = #tpu.pipeline_mode<synchronous>, transform_indices = @transform_1, window_bounds = array<i64: 5, 96, 56>}, {pipeline_mode = #tpu.pipeline_mode<synchronous>, transform_indices = @transform_2, window_bounds = array<i64: 5, 96, 56>}, {pipeline_mode = #tpu.pipeline_mode<synchronous>, transform_indices = @transform_3, window_bounds = array<i64: 1, 56>}, {pipeline_mode = #tpu.pipeline_mode<synchronous>, transform_indices = @transform_4, window_bounds = array<i64: 5, 56, 40>}, {pipeline_mode = #tpu.pipeline_mode<synchronous>, transform_indices = @transform_5, window_bounds = array<i64: 5, 56, 40>}, {pipeline_mode = #tpu.pipeline_mode<synchronous>, transform_indices = @transform_6, window_bounds = array<i64: 1, 40>}, {pipeline_mode = #tpu.pipeline_mode<synchronous>, transform_indices = @transform_7, window_bounds = array<i64: 5, 40, 40>}, {pipeline_mode = #tpu.pipeline_mode<synchronous>, transform_indices = @transform_8, window_bounds = array<i64: 1, 40>}, {transform_indices = @transform_9, window_bounds = array<i64: 8, 40>}]} {
    %c0 = arith.constant 0 : index
    %c0_0 = arith.constant 0 : index
    %c0_1 = arith.constant 0 : index
    %0 = vector.load %arg1[%c0, %c0_0, %c0_1] : memref<32x8x96xf32, #tpu.memory_space<vmem>>, vector<32x8x96xf32>
    %cst = arith.constant 0.000000e+00 : f32
    %1 = vector.broadcast %cst : f32 to vector<224x56xf32>
    %cst_2 = arith.constant 0.000000e+00 : f32
    %2 = vector.broadcast %cst_2 : f32 to vector<224x56xf32>
    %3 = vector.extract_strided_slice %0 {offsets = [0, 0, 0], sizes = [28, 8, 96], strides = [1, 1, 1]} : vector<32x8x96xf32> to vector<28x8x96xf32>
    %4 = vector.shape_cast %3 : vector<28x8x96xf32> to vector<224x96xf32>
    %c0_3 = arith.constant 0 : index
    %c0_4 = arith.constant 0 : index
    %c0_5 = arith.constant 0 : index
    %5 = vector.load %arg2[%c0_3, %c0_4, %c0_5] : memref<5x96x56xf32, #tpu.memory_space<vmem>>, vector<1x96x56xf32>
    %6 = vector.shape_cast %5 : vector<1x96x56xf32> to vector<96x56xf32>
    %cst_6 = arith.constant dense<0.000000e+00> : vector<224x56xf32>
    %7 = tpu.matmul %4, %6, %cst_6 {dimension_numbers = #tpu.dot_dimension_numbers<[1], [0], [0], [1], [0, 0, 1, 1], [], []>} : vector<224x96xf32>, vector<96x56xf32>, vector<224x56xf32> -> vector<224x56xf32>
    %8 = arith.addf %1, %7 : vector<224x56xf32>
    %c0_7 = arith.constant 0 : index
    %c0_8 = arith.constant 0 : index
    %c0_9 = arith.constant 0 : index
    %9 = vector.load %arg3[%c0_7, %c0_8, %c0_9] : memref<5x96x56xf32, #tpu.memory_space<vmem>>, vector<1x96x56xf32>
    %10 = vector.shape_cast %9 : vector<1x96x56xf32> to vector<96x56xf32>
    %cst_10 = arith.constant dense<0.000000e+00> : vector<224x56xf32>
    %11 = tpu.matmul %4, %10, %cst_10 {dimension_numbers = #tpu.dot_dimension_numbers<[1], [0], [0], [1], [0, 0, 1, 1], [], []>} : vector<224x96xf32>, vector<96x56xf32>, vector<224x56xf32> -> vector<224x56xf32>
    %12 = arith.addf %2, %11 : vector<224x56xf32>
    %13 = vector.extract_strided_slice %0 {offsets = [1, 0, 0], sizes = [28, 8, 96], strides = [1, 1, 1]} : vector<32x8x96xf32> to vector<28x8x96xf32>
    %14 = vector.shape_cast %13 : vector<28x8x96xf32> to vector<224x96xf32>
    %c1 = arith.constant 1 : index
    %c0_11 = arith.constant 0 : index
    %c0_12 = arith.constant 0 : index
    %15 = vector.load %arg2[%c1, %c0_11, %c0_12] : memref<5x96x56xf32, #tpu.memory_space<vmem>>, vector<1x96x56xf32>
    %16 = vector.shape_cast %15 : vector<1x96x56xf32> to vector<96x56xf32>
    %cst_13 = arith.constant dense<0.000000e+00> : vector<224x56xf32>
    %17 = tpu.matmul %14, %16, %cst_13 {dimension_numbers = #tpu.dot_dimension_numbers<[1], [0], [0], [1], [0, 0, 1, 1], [], []>} : vector<224x96xf32>, vector<96x56xf32>, vector<224x56xf32> -> vector<224x56xf32>
    %18 = arith.addf %8, %17 : vector<224x56xf32>
    %c1_14 = arith.constant 1 : index
    %c0_15 = arith.constant 0 : index
    %c0_16 = arith.constant 0 : index
    %19 = vector.load %arg3[%c1_14, %c0_15, %c0_16] : memref<5x96x56xf32, #tpu.memory_space<vmem>>, vector<1x96x56xf32>
    %20 = vector.shape_cast %19 : vector<1x96x56xf32> to vector<96x56xf32>
    %cst_17 = arith.constant dense<0.000000e+00> : vector<224x56xf32>
    %21 = tpu.matmul %14, %20, %cst_17 {dimension_numbers = #tpu.dot_dimension_numbers<[1], [0], [0], [1], [0, 0, 1, 1], [], []>} : vector<224x96xf32>, vector<96x56xf32>, vector<224x56xf32> -> vector<224x56xf32>
    %22 = arith.addf %12, %21 : vector<224x56xf32>
    %23 = vector.extract_strided_slice %0 {offsets = [2, 0, 0], sizes = [28, 8, 96], strides = [1, 1, 1]} : vector<32x8x96xf32> to vector<28x8x96xf32>
    %24 = vector.shape_cast %23 : vector<28x8x96xf32> to vector<224x96xf32>
    %c2 = arith.constant 2 : index
    %c0_18 = arith.constant 0 : index
    %c0_19 = arith.constant 0 : index
    %25 = vector.load %arg2[%c2, %c0_18, %c0_19] : memref<5x96x56xf32, #tpu.memory_space<vmem>>, vector<1x96x56xf32>
    %26 = vector.shape_cast %25 : vector<1x96x56xf32> to vector<96x56xf32>
    %cst_20 = arith.constant dense<0.000000e+00> : vector<224x56xf32>
    %27 = tpu.matmul %24, %26, %cst_20 {dimension_numbers = #tpu.dot_dimension_numbers<[1], [0], [0], [1], [0, 0, 1, 1], [], []>} : vector<224x96xf32>, vector<96x56xf32>, vector<224x56xf32> -> vector<224x56xf32>
    %28 = arith.addf %18, %27 : vector<224x56xf32>
    %c2_21 = arith.constant 2 : index
    %c0_22 = arith.constant 0 : index
    %c0_23 = arith.constant 0 : index
    %29 = vector.load %arg3[%c2_21, %c0_22, %c0_23] : memref<5x96x56xf32, #tpu.memory_space<vmem>>, vector<1x96x56xf32>
    %30 = vector.shape_cast %29 : vector<1x96x56xf32> to vector<96x56xf32>
    %cst_24 = arith.constant dense<0.000000e+00> : vector<224x56xf32>
    %31 = tpu.matmul %24, %30, %cst_24 {dimension_numbers = #tpu.dot_dimension_numbers<[1], [0], [0], [1], [0, 0, 1, 1], [], []>} : vector<224x96xf32>, vector<96x56xf32>, vector<224x56xf32> -> vector<224x56xf32>
    %32 = arith.addf %22, %31 : vector<224x56xf32>
    %33 = vector.extract_strided_slice %0 {offsets = [3, 0, 0], sizes = [28, 8, 96], strides = [1, 1, 1]} : vector<32x8x96xf32> to vector<28x8x96xf32>
    %34 = vector.shape_cast %33 : vector<28x8x96xf32> to vector<224x96xf32>
    %c3 = arith.constant 3 : index
    %c0_25 = arith.constant 0 : index
    %c0_26 = arith.constant 0 : index
    %35 = vector.load %arg2[%c3, %c0_25, %c0_26] : memref<5x96x56xf32, #tpu.memory_space<vmem>>, vector<1x96x56xf32>
    %36 = vector.shape_cast %35 : vector<1x96x56xf32> to vector<96x56xf32>
    %cst_27 = arith.constant dense<0.000000e+00> : vector<224x56xf32>
    %37 = tpu.matmul %34, %36, %cst_27 {dimension_numbers = #tpu.dot_dimension_numbers<[1], [0], [0], [1], [0, 0, 1, 1], [], []>} : vector<224x96xf32>, vector<96x56xf32>, vector<224x56xf32> -> vector<224x56xf32>
    %38 = arith.addf %28, %37 : vector<224x56xf32>
    %c3_28 = arith.constant 3 : index
    %c0_29 = arith.constant 0 : index
    %c0_30 = arith.constant 0 : index
    %39 = vector.load %arg3[%c3_28, %c0_29, %c0_30] : memref<5x96x56xf32, #tpu.memory_space<vmem>>, vector<1x96x56xf32>
    %40 = vector.shape_cast %39 : vector<1x96x56xf32> to vector<96x56xf32>
    %cst_31 = arith.constant dense<0.000000e+00> : vector<224x56xf32>
    %41 = tpu.matmul %34, %40, %cst_31 {dimension_numbers = #tpu.dot_dimension_numbers<[1], [0], [0], [1], [0, 0, 1, 1], [], []>} : vector<224x96xf32>, vector<96x56xf32>, vector<224x56xf32> -> vector<224x56xf32>
    %42 = arith.addf %32, %41 : vector<224x56xf32>
    %43 = vector.extract_strided_slice %0 {offsets = [4, 0, 0], sizes = [28, 8, 96], strides = [1, 1, 1]} : vector<32x8x96xf32> to vector<28x8x96xf32>
    %44 = vector.shape_cast %43 : vector<28x8x96xf32> to vector<224x96xf32>
    %c4 = arith.constant 4 : index
    %c0_32 = arith.constant 0 : index
    %c0_33 = arith.constant 0 : index
    %45 = vector.load %arg2[%c4, %c0_32, %c0_33] : memref<5x96x56xf32, #tpu.memory_space<vmem>>, vector<1x96x56xf32>
    %46 = vector.shape_cast %45 : vector<1x96x56xf32> to vector<96x56xf32>
    %cst_34 = arith.constant dense<0.000000e+00> : vector<224x56xf32>
    %47 = tpu.matmul %44, %46, %cst_34 {dimension_numbers = #tpu.dot_dimension_numbers<[1], [0], [0], [1], [0, 0, 1, 1], [], []>} : vector<224x96xf32>, vector<96x56xf32>, vector<224x56xf32> -> vector<224x56xf32>
    %48 = arith.addf %38, %47 : vector<224x56xf32>
    %c4_35 = arith.constant 4 : index
    %c0_36 = arith.constant 0 : index
    %c0_37 = arith.constant 0 : index
    %49 = vector.load %arg3[%c4_35, %c0_36, %c0_37] : memref<5x96x56xf32, #tpu.memory_space<vmem>>, vector<1x96x56xf32>
    %50 = vector.shape_cast %49 : vector<1x96x56xf32> to vector<96x56xf32>
    %cst_38 = arith.constant dense<0.000000e+00> : vector<224x56xf32>
    %51 = tpu.matmul %44, %50, %cst_38 {dimension_numbers = #tpu.dot_dimension_numbers<[1], [0], [0], [1], [0, 0, 1, 1], [], []>} : vector<224x96xf32>, vector<96x56xf32>, vector<224x56xf32> -> vector<224x56xf32>
    %52 = arith.addf %42, %51 : vector<224x56xf32>
    %53 = arith.maximumf %48, %52 : vector<224x56xf32>
    %c0_39 = arith.constant 0 : index
    %c0_40 = arith.constant 0 : index
    %54 = vector.load %arg4[%c0_39, %c0_40] : memref<1x56xf32, #tpu.memory_space<vmem>>, vector<1x56xf32>
    %55 = vector.broadcast %54 : vector<1x56xf32> to vector<224x56xf32>
    %56 = arith.addf %53, %55 : vector<224x56xf32>
    %cst_41 = arith.constant 0.000000e+00 : f32
    %57 = vector.broadcast %cst_41 : f32 to vector<224x56xf32>
    %58 = arith.maximumf %56, %57 : vector<224x56xf32>
    %59 = vector.shape_cast %58 : vector<224x56xf32> to vector<14x2x8x56xf32>
    %60 = vector.extract_strided_slice %59 {offsets = [0, 0, 0, 0], sizes = [14, 1, 8, 56], strides = [1, 1, 1, 1]} : vector<14x2x8x56xf32> to vector<14x1x8x56xf32>
    %61 = vector.shape_cast %60 : vector<14x1x8x56xf32> to vector<14x8x56xf32>
    %62 = vector.extract_strided_slice %59 {offsets = [0, 1, 0, 0], sizes = [14, 1, 8, 56], strides = [1, 1, 1, 1]} : vector<14x2x8x56xf32> to vector<14x1x8x56xf32>
    %63 = vector.shape_cast %62 : vector<14x1x8x56xf32> to vector<14x8x56xf32>
    %64 = arith.maximumf %61, %63 : vector<14x8x56xf32>
    %cst_42 = arith.constant 0.000000e+00 : f32
    %65 = vector.broadcast %cst_42 : f32 to vector<80x40xf32>
    %cst_43 = arith.constant 0.000000e+00 : f32
    %66 = vector.broadcast %cst_43 : f32 to vector<80x40xf32>
    %67 = vector.extract_strided_slice %64 {offsets = [0, 0, 0], sizes = [10, 8, 56], strides = [1, 1, 1]} : vector<14x8x56xf32> to vector<10x8x56xf32>
    %68 = vector.shape_cast %67 : vector<10x8x56xf32> to vector<80x56xf32>
    %c0_44 = arith.constant 0 : index
    %c0_45 = arith.constant 0 : index
    %c0_46 = arith.constant 0 : index
    %69 = vector.load %arg5[%c0_44, %c0_45, %c0_46] : memref<5x56x40xf32, #tpu.memory_space<vmem>>, vector<1x56x40xf32>
    %70 = vector.shape_cast %69 : vector<1x56x40xf32> to vector<56x40xf32>
    %cst_47 = arith.constant dense<0.000000e+00> : vector<80x40xf32>
    %71 = tpu.matmul %68, %70, %cst_47 {dimension_numbers = #tpu.dot_dimension_numbers<[1], [0], [0], [1], [0, 0, 1, 1], [], []>} : vector<80x56xf32>, vector<56x40xf32>, vector<80x40xf32> -> vector<80x40xf32>
    %72 = arith.addf %65, %71 : vector<80x40xf32>
    %c0_48 = arith.constant 0 : index
    %c0_49 = arith.constant 0 : index
    %c0_50 = arith.constant 0 : index
    %73 = vector.load %arg6[%c0_48, %c0_49, %c0_50] : memref<5x56x40xf32, #tpu.memory_space<vmem>>, vector<1x56x40xf32>
    %74 = vector.shape_cast %73 : vector<1x56x40xf32> to vector<56x40xf32>
    %cst_51 = arith.constant dense<0.000000e+00> : vector<80x40xf32>
    %75 = tpu.matmul %68, %74, %cst_51 {dimension_numbers = #tpu.dot_dimension_numbers<[1], [0], [0], [1], [0, 0, 1, 1], [], []>} : vector<80x56xf32>, vector<56x40xf32>, vector<80x40xf32> -> vector<80x40xf32>
    %76 = arith.addf %66, %75 : vector<80x40xf32>
    %77 = vector.extract_strided_slice %64 {offsets = [1, 0, 0], sizes = [10, 8, 56], strides = [1, 1, 1]} : vector<14x8x56xf32> to vector<10x8x56xf32>
    %78 = vector.shape_cast %77 : vector<10x8x56xf32> to vector<80x56xf32>
    %c1_52 = arith.constant 1 : index
    %c0_53 = arith.constant 0 : index
    %c0_54 = arith.constant 0 : index
    %79 = vector.load %arg5[%c1_52, %c0_53, %c0_54] : memref<5x56x40xf32, #tpu.memory_space<vmem>>, vector<1x56x40xf32>
    %80 = vector.shape_cast %79 : vector<1x56x40xf32> to vector<56x40xf32>
    %cst_55 = arith.constant dense<0.000000e+00> : vector<80x40xf32>
    %81 = tpu.matmul %78, %80, %cst_55 {dimension_numbers = #tpu.dot_dimension_numbers<[1], [0], [0], [1], [0, 0, 1, 1], [], []>} : vector<80x56xf32>, vector<56x40xf32>, vector<80x40xf32> -> vector<80x40xf32>
    %82 = arith.addf %72, %81 : vector<80x40xf32>
    %c1_56 = arith.constant 1 : index
    %c0_57 = arith.constant 0 : index
    %c0_58 = arith.constant 0 : index
    %83 = vector.load %arg6[%c1_56, %c0_57, %c0_58] : memref<5x56x40xf32, #tpu.memory_space<vmem>>, vector<1x56x40xf32>
    %84 = vector.shape_cast %83 : vector<1x56x40xf32> to vector<56x40xf32>
    %cst_59 = arith.constant dense<0.000000e+00> : vector<80x40xf32>
    %85 = tpu.matmul %78, %84, %cst_59 {dimension_numbers = #tpu.dot_dimension_numbers<[1], [0], [0], [1], [0, 0, 1, 1], [], []>} : vector<80x56xf32>, vector<56x40xf32>, vector<80x40xf32> -> vector<80x40xf32>
    %86 = arith.addf %76, %85 : vector<80x40xf32>
    %87 = vector.extract_strided_slice %64 {offsets = [2, 0, 0], sizes = [10, 8, 56], strides = [1, 1, 1]} : vector<14x8x56xf32> to vector<10x8x56xf32>
    %88 = vector.shape_cast %87 : vector<10x8x56xf32> to vector<80x56xf32>
    %c2_60 = arith.constant 2 : index
    %c0_61 = arith.constant 0 : index
    %c0_62 = arith.constant 0 : index
    %89 = vector.load %arg5[%c2_60, %c0_61, %c0_62] : memref<5x56x40xf32, #tpu.memory_space<vmem>>, vector<1x56x40xf32>
    %90 = vector.shape_cast %89 : vector<1x56x40xf32> to vector<56x40xf32>
    %cst_63 = arith.constant dense<0.000000e+00> : vector<80x40xf32>
    %91 = tpu.matmul %88, %90, %cst_63 {dimension_numbers = #tpu.dot_dimension_numbers<[1], [0], [0], [1], [0, 0, 1, 1], [], []>} : vector<80x56xf32>, vector<56x40xf32>, vector<80x40xf32> -> vector<80x40xf32>
    %92 = arith.addf %82, %91 : vector<80x40xf32>
    %c2_64 = arith.constant 2 : index
    %c0_65 = arith.constant 0 : index
    %c0_66 = arith.constant 0 : index
    %93 = vector.load %arg6[%c2_64, %c0_65, %c0_66] : memref<5x56x40xf32, #tpu.memory_space<vmem>>, vector<1x56x40xf32>
    %94 = vector.shape_cast %93 : vector<1x56x40xf32> to vector<56x40xf32>
    %cst_67 = arith.constant dense<0.000000e+00> : vector<80x40xf32>
    %95 = tpu.matmul %88, %94, %cst_67 {dimension_numbers = #tpu.dot_dimension_numbers<[1], [0], [0], [1], [0, 0, 1, 1], [], []>} : vector<80x56xf32>, vector<56x40xf32>, vector<80x40xf32> -> vector<80x40xf32>
    %96 = arith.addf %86, %95 : vector<80x40xf32>
    %97 = vector.extract_strided_slice %64 {offsets = [3, 0, 0], sizes = [10, 8, 56], strides = [1, 1, 1]} : vector<14x8x56xf32> to vector<10x8x56xf32>
    %98 = vector.shape_cast %97 : vector<10x8x56xf32> to vector<80x56xf32>
    %c3_68 = arith.constant 3 : index
    %c0_69 = arith.constant 0 : index
    %c0_70 = arith.constant 0 : index
    %99 = vector.load %arg5[%c3_68, %c0_69, %c0_70] : memref<5x56x40xf32, #tpu.memory_space<vmem>>, vector<1x56x40xf32>
    %100 = vector.shape_cast %99 : vector<1x56x40xf32> to vector<56x40xf32>
    %cst_71 = arith.constant dense<0.000000e+00> : vector<80x40xf32>
    %101 = tpu.matmul %98, %100, %cst_71 {dimension_numbers = #tpu.dot_dimension_numbers<[1], [0], [0], [1], [0, 0, 1, 1], [], []>} : vector<80x56xf32>, vector<56x40xf32>, vector<80x40xf32> -> vector<80x40xf32>
    %102 = arith.addf %92, %101 : vector<80x40xf32>
    %c3_72 = arith.constant 3 : index
    %c0_73 = arith.constant 0 : index
    %c0_74 = arith.constant 0 : index
    %103 = vector.load %arg6[%c3_72, %c0_73, %c0_74] : memref<5x56x40xf32, #tpu.memory_space<vmem>>, vector<1x56x40xf32>
    %104 = vector.shape_cast %103 : vector<1x56x40xf32> to vector<56x40xf32>
    %cst_75 = arith.constant dense<0.000000e+00> : vector<80x40xf32>
    %105 = tpu.matmul %98, %104, %cst_75 {dimension_numbers = #tpu.dot_dimension_numbers<[1], [0], [0], [1], [0, 0, 1, 1], [], []>} : vector<80x56xf32>, vector<56x40xf32>, vector<80x40xf32> -> vector<80x40xf32>
    %106 = arith.addf %96, %105 : vector<80x40xf32>
    %107 = vector.extract_strided_slice %64 {offsets = [4, 0, 0], sizes = [10, 8, 56], strides = [1, 1, 1]} : vector<14x8x56xf32> to vector<10x8x56xf32>
    %108 = vector.shape_cast %107 : vector<10x8x56xf32> to vector<80x56xf32>
    %c4_76 = arith.constant 4 : index
    %c0_77 = arith.constant 0 : index
    %c0_78 = arith.constant 0 : index
    %109 = vector.load %arg5[%c4_76, %c0_77, %c0_78] : memref<5x56x40xf32, #tpu.memory_space<vmem>>, vector<1x56x40xf32>
    %110 = vector.shape_cast %109 : vector<1x56x40xf32> to vector<56x40xf32>
    %cst_79 = arith.constant dense<0.000000e+00> : vector<80x40xf32>
    %111 = tpu.matmul %108, %110, %cst_79 {dimension_numbers = #tpu.dot_dimension_numbers<[1], [0], [0], [1], [0, 0, 1, 1], [], []>} : vector<80x56xf32>, vector<56x40xf32>, vector<80x40xf32> -> vector<80x40xf32>
    %112 = arith.addf %102, %111 : vector<80x40xf32>
    %c4_80 = arith.constant 4 : index
    %c0_81 = arith.constant 0 : index
    %c0_82 = arith.constant 0 : index
    %113 = vector.load %arg6[%c4_80, %c0_81, %c0_82] : memref<5x56x40xf32, #tpu.memory_space<vmem>>, vector<1x56x40xf32>
    %114 = vector.shape_cast %113 : vector<1x56x40xf32> to vector<56x40xf32>
    %cst_83 = arith.constant dense<0.000000e+00> : vector<80x40xf32>
    %115 = tpu.matmul %108, %114, %cst_83 {dimension_numbers = #tpu.dot_dimension_numbers<[1], [0], [0], [1], [0, 0, 1, 1], [], []>} : vector<80x56xf32>, vector<56x40xf32>, vector<80x40xf32> -> vector<80x40xf32>
    %116 = arith.addf %106, %115 : vector<80x40xf32>
    %117 = arith.maximumf %112, %116 : vector<80x40xf32>
    %c0_84 = arith.constant 0 : index
    %c0_85 = arith.constant 0 : index
    %118 = vector.load %arg7[%c0_84, %c0_85] : memref<1x40xf32, #tpu.memory_space<vmem>>, vector<1x40xf32>
    %119 = vector.broadcast %118 : vector<1x40xf32> to vector<80x40xf32>
    %120 = arith.addf %117, %119 : vector<80x40xf32>
    %cst_86 = arith.constant 0.000000e+00 : f32
    %121 = vector.broadcast %cst_86 : f32 to vector<80x40xf32>
    %122 = arith.maximumf %120, %121 : vector<80x40xf32>
    %123 = vector.shape_cast %122 : vector<80x40xf32> to vector<5x2x8x40xf32>
    %124 = vector.extract_strided_slice %123 {offsets = [0, 0, 0, 0], sizes = [5, 1, 8, 40], strides = [1, 1, 1, 1]} : vector<5x2x8x40xf32> to vector<5x1x8x40xf32>
    %125 = vector.shape_cast %124 : vector<5x1x8x40xf32> to vector<5x8x40xf32>
    %126 = vector.extract_strided_slice %123 {offsets = [0, 1, 0, 0], sizes = [5, 1, 8, 40], strides = [1, 1, 1, 1]} : vector<5x2x8x40xf32> to vector<5x1x8x40xf32>
    %127 = vector.shape_cast %126 : vector<5x1x8x40xf32> to vector<5x8x40xf32>
    %128 = arith.maximumf %125, %127 : vector<5x8x40xf32>
    %cst_87 = arith.constant 0.000000e+00 : f32
    %129 = vector.broadcast %cst_87 : f32 to vector<8x40xf32>
    %130 = vector.extract_strided_slice %128 {offsets = [0, 0, 0], sizes = [1, 8, 40], strides = [1, 1, 1]} : vector<5x8x40xf32> to vector<1x8x40xf32>
    %131 = vector.shape_cast %130 : vector<1x8x40xf32> to vector<8x40xf32>
    %c0_88 = arith.constant 0 : index
    %c0_89 = arith.constant 0 : index
    %c0_90 = arith.constant 0 : index
    %132 = vector.load %arg8[%c0_88, %c0_89, %c0_90] : memref<5x40x40xf32, #tpu.memory_space<vmem>>, vector<1x40x40xf32>
    %133 = vector.shape_cast %132 : vector<1x40x40xf32> to vector<40x40xf32>
    %cst_91 = arith.constant dense<0.000000e+00> : vector<8x40xf32>
    %134 = tpu.matmul %131, %133, %cst_91 {dimension_numbers = #tpu.dot_dimension_numbers<[1], [0], [0], [1], [0, 0, 1, 1], [], []>} : vector<8x40xf32>, vector<40x40xf32>, vector<8x40xf32> -> vector<8x40xf32>
    %135 = arith.addf %129, %134 : vector<8x40xf32>
    %136 = vector.extract_strided_slice %128 {offsets = [1, 0, 0], sizes = [1, 8, 40], strides = [1, 1, 1]} : vector<5x8x40xf32> to vector<1x8x40xf32>
    %137 = vector.shape_cast %136 : vector<1x8x40xf32> to vector<8x40xf32>
    %c1_92 = arith.constant 1 : index
    %c0_93 = arith.constant 0 : index
    %c0_94 = arith.constant 0 : index
    %138 = vector.load %arg8[%c1_92, %c0_93, %c0_94] : memref<5x40x40xf32, #tpu.memory_space<vmem>>, vector<1x40x40xf32>
    %139 = vector.shape_cast %138 : vector<1x40x40xf32> to vector<40x40xf32>
    %cst_95 = arith.constant dense<0.000000e+00> : vector<8x40xf32>
    %140 = tpu.matmul %137, %139, %cst_95 {dimension_numbers = #tpu.dot_dimension_numbers<[1], [0], [0], [1], [0, 0, 1, 1], [], []>} : vector<8x40xf32>, vector<40x40xf32>, vector<8x40xf32> -> vector<8x40xf32>
    %141 = arith.addf %135, %140 : vector<8x40xf32>
    %142 = vector.extract_strided_slice %128 {offsets = [2, 0, 0], sizes = [1, 8, 40], strides = [1, 1, 1]} : vector<5x8x40xf32> to vector<1x8x40xf32>
    %143 = vector.shape_cast %142 : vector<1x8x40xf32> to vector<8x40xf32>
    %c2_96 = arith.constant 2 : index
    %c0_97 = arith.constant 0 : index
    %c0_98 = arith.constant 0 : index
    %144 = vector.load %arg8[%c2_96, %c0_97, %c0_98] : memref<5x40x40xf32, #tpu.memory_space<vmem>>, vector<1x40x40xf32>
    %145 = vector.shape_cast %144 : vector<1x40x40xf32> to vector<40x40xf32>
    %cst_99 = arith.constant dense<0.000000e+00> : vector<8x40xf32>
    %146 = tpu.matmul %143, %145, %cst_99 {dimension_numbers = #tpu.dot_dimension_numbers<[1], [0], [0], [1], [0, 0, 1, 1], [], []>} : vector<8x40xf32>, vector<40x40xf32>, vector<8x40xf32> -> vector<8x40xf32>
    %147 = arith.addf %141, %146 : vector<8x40xf32>
    %148 = vector.extract_strided_slice %128 {offsets = [3, 0, 0], sizes = [1, 8, 40], strides = [1, 1, 1]} : vector<5x8x40xf32> to vector<1x8x40xf32>
    %149 = vector.shape_cast %148 : vector<1x8x40xf32> to vector<8x40xf32>
    %c3_100 = arith.constant 3 : index
    %c0_101 = arith.constant 0 : index
    %c0_102 = arith.constant 0 : index
    %150 = vector.load %arg8[%c3_100, %c0_101, %c0_102] : memref<5x40x40xf32, #tpu.memory_space<vmem>>, vector<1x40x40xf32>
    %151 = vector.shape_cast %150 : vector<1x40x40xf32> to vector<40x40xf32>
    %cst_103 = arith.constant dense<0.000000e+00> : vector<8x40xf32>
    %152 = tpu.matmul %149, %151, %cst_103 {dimension_numbers = #tpu.dot_dimension_numbers<[1], [0], [0], [1], [0, 0, 1, 1], [], []>} : vector<8x40xf32>, vector<40x40xf32>, vector<8x40xf32> -> vector<8x40xf32>
    %153 = arith.addf %147, %152 : vector<8x40xf32>
    %154 = vector.extract_strided_slice %128 {offsets = [4, 0, 0], sizes = [1, 8, 40], strides = [1, 1, 1]} : vector<5x8x40xf32> to vector<1x8x40xf32>
    %155 = vector.shape_cast %154 : vector<1x8x40xf32> to vector<8x40xf32>
    %c4_104 = arith.constant 4 : index
    %c0_105 = arith.constant 0 : index
    %c0_106 = arith.constant 0 : index
    %156 = vector.load %arg8[%c4_104, %c0_105, %c0_106] : memref<5x40x40xf32, #tpu.memory_space<vmem>>, vector<1x40x40xf32>
    %157 = vector.shape_cast %156 : vector<1x40x40xf32> to vector<40x40xf32>
    %cst_107 = arith.constant dense<0.000000e+00> : vector<8x40xf32>
    %158 = tpu.matmul %155, %157, %cst_107 {dimension_numbers = #tpu.dot_dimension_numbers<[1], [0], [0], [1], [0, 0, 1, 1], [], []>} : vector<8x40xf32>, vector<40x40xf32>, vector<8x40xf32> -> vector<8x40xf32>
    %159 = arith.addf %153, %158 : vector<8x40xf32>
    %c0_108 = arith.constant 0 : index
    %c0_109 = arith.constant 0 : index
    %160 = vector.load %arg9[%c0_108, %c0_109] : memref<1x40xf32, #tpu.memory_space<vmem>>, vector<1x40xf32>
    %161 = vector.broadcast %160 : vector<1x40xf32> to vector<8x40xf32>
    %162 = arith.addf %159, %161 : vector<8x40xf32>
    %c0_110 = arith.constant 0 : index
    %c0_111 = arith.constant 0 : index
    %163 = vector.load %arg10[%c0_110, %c0_111] : memref<8x40xf32, #tpu.memory_space<vmem>>, vector<8x40xf32>
    tpu.vector_store %arg10[%c0_110, %c0_111], %162 {strides = array<i32>} : memref<8x40xf32, #tpu.memory_space<vmem>>, vector<8x40xf32>,
    return
  }
  func.func @transform_0(%arg0: i32) -> (i32, i32, i32) {
    %c0_i32 = arith.constant 0 : i32
    %c0_i32_0 = arith.constant 0 : i32
    %c0_i32_1 = arith.constant 0 : i32
    return %c0_i32, %arg0, %c0_i32_0 : i32, i32, i32
  }
  func.func @transform_1(%arg0: i32) -> (i32, i32, i32) {
    %c0_i32 = arith.constant 0 : i32
    %c0_i32_0 = arith.constant 0 : i32
    %c0_i32_1 = arith.constant 0 : i32
    %c0_i32_2 = arith.constant 0 : i32
    return %c0_i32, %c0_i32_0, %c0_i32_1 : i32, i32, i32
  }
  func.func @transform_2(%arg0: i32) -> (i32, i32, i32) {
    %c0_i32 = arith.constant 0 : i32
    %c0_i32_0 = arith.constant 0 : i32
    %c0_i32_1 = arith.constant 0 : i32
    %c0_i32_2 = arith.constant 0 : i32
    return %c0_i32, %c0_i32_0, %c0_i32_1 : i32, i32, i32
  }
  func.func @transform_3(%arg0: i32) -> (i32, i32) {
    %c0_i32 = arith.constant 0 : i32
    %c0_i32_0 = arith.constant 0 : i32
    %c0_i32_1 = arith.constant 0 : i32
    return %c0_i32, %c0_i32_0 : i32, i32
  }
  func.func @transform_4(%arg0: i32) -> (i32, i32, i32) {
    %c0_i32 = arith.constant 0 : i32
    %c0_i32_0 = arith.constant 0 : i32
    %c0_i32_1 = arith.constant 0 : i32
    %c0_i32_2 = arith.constant 0 : i32
    return %c0_i32, %c0_i32_0, %c0_i32_1 : i32, i32, i32
  }
  func.func @transform_5(%arg0: i32) -> (i32, i32, i32) {
    %c0_i32 = arith.constant 0 : i32
    %c0_i32_0 = arith.constant 0 : i32
    %c0_i32_1 = arith.constant 0 : i32
    %c0_i32_2 = arith.constant 0 : i32
    return %c0_i32, %c0_i32_0, %c0_i32_1 : i32, i32, i32
  }
  func.func @transform_6(%arg0: i32) -> (i32, i32) {
    %c0_i32 = arith.constant 0 : i32
    %c0_i32_0 = arith.constant 0 : i32
    %c0_i32_1 = arith.constant 0 : i32
    return %c0_i32, %c0_i32_0 : i32, i32
  }
  func.func @transform_7(%arg0: i32) -> (i32, i32, i32) {
    %c0_i32 = arith.constant 0 : i32
    %c0_i32_0 = arith.constant 0 : i32
    %c0_i32_1 = arith.constant 0 : i32
    %c0_i32_2 = arith.constant 0 : i32
    return %c0_i32, %c0_i32_0, %c0_i32_1 : i32, i32, i32
  }
  func.func @transform_8(%arg0: i32) -> (i32, i32) {
    %c0_i32 = arith.constant 0 : i32
    %c0_i32_0 = arith.constant 0 : i32
    %c0_i32_1 = arith.constant 0 : i32
    return %c0_i32, %c0_i32_0 : i32, i32
  }
  func.func @transform_9(%arg0: i32) -> (i32, i32) {
    %c0_i32 = arith.constant 0 : i32
    %c0_i32_0 = arith.constant 0 : i32
    return %arg0, %c0_i32 : i32, i32
  }
}

</mosaic_0001>

<bundles_post_ra>
// kernel: _lambda_.1
= control target key start
LH: loop header
LB: loop body
LE: loop exit
PB: predicated region body
PF: predicated region fallthrough
CT: control target
= control target key end

     0   :  { %14 = vsyncpa [#allocation3], 0  ;;  %s8829_s0 = inlined_call_operand.vmem [shape: f32[32,8,96], index: 0, kind: input, shape index: {}]   ;;  %s8830_s1 = inlined_call_operand.vmem [shape: f32[5,96,56], index: 1, kind: input, shape index: {}]   ;;  %s8831_s2 = inlined_call_operand.vmem [shape: f32[5,96,56], index: 2, kind: input, shape index: {}]   ;;  %s8832_s3 = inlined_call_operand.vmem [shape: f32[1,56], index: 3, kind: input, shape index: {}]   ;;  %s8833_s4 = inlined_call_operand.hbm [shape: f32[5,56,40], index: 4, kind: input, shape index: {}]   ;;  %s8834_s5 = inlined_call_operand.hbm [shape: f32[5,56,40], index: 5, kind: input, shape index: {}]   ;;  %s8835_s6 = inlined_call_operand.vmem [shape: f32[1,40], index: 6, kind: input, shape index: {}]   ;;  %s8836_s7 = inlined_call_operand.hbm [shape: f32[5,40,40], index: 7, kind: input, shape index: {}]   ;;  %s8837_s8 = inlined_call_operand.vmem [shape: f32[1,40], index: 8, kind: input, shape index: {}]   ;;  %s8838_s9 = inlined_call_operand.vmem [shape: f32[8,40], index: 9, kind: output, shape index: {}]  }
   0x1   :  { %15 = vsyncpa [#allocation5], 0  ;;  %s7310_s30 = smov [#allocation4]   ;;  %s7311_s11 = smov [#allocation2]  }
   0x2   :  { %s41_s10 = sshll.u32 %s7310_s30, 4  ;;  %s29_s12 = sshll.u32 %s7311_s11, 4  ;;  %s42_s10 = int_to_ptr.vmem [resolvable:$true] %s41_s10  ;;  %s7368_s12 = int_to_ptr.vmem [resolvable:$true] %s29_s12 }
   0x3   :  { %s7240_s15 = scalar_lea.hbm %s8834_s5, 4480 }
   0x4   :  { %p7241_p0 = scmp.ne.s32.totalorder %s8834_s5, %s7240_s15  ;;  %p7244_p1 = scmp.lt.u32.totalorder %s7240_s15, %s8834_s5 }
   0x6   :  { %p7246_p2 = pnand %p7244_p1, %p7241_p0 }
   0x8   :  { %7249 = shalt.err (!%p7246_p2)
}
   0x9   :  { %s7250_s20 = scalar_lea.vmem %s42_s10, 4480  ;;  %p7255_p4 = scmp.lt.s32.totalorder %s42_s10, %s42_s10 }
   0xa   :  { %p7251_p3 = scmp.ne.s32.totalorder %s42_s10, %s7250_s20  ;;  %p7256_p5 = scmp.lt.s32.totalorder %s7250_s20, %s7250_s20 }
   0xc   :  { %p7257_p6 = por %p7256_p5, %p7255_p4 }
   0xe   :  { %p7258_p7 = pnand %p7257_p6, %p7251_p3 }
  0x10   :  { %7261 = shalt.err (!%p7258_p7)
}
  0x11   :  { %s7312_s21 = smov 128   ;;  %s7313_s22 = smov 8  }
  0x12   :  { %47 = dma.hbm_to_vmem [thread:$0]  %s8834_s5, 4480, %s42_s10, [#allocation5], %s7312_s21, %s7312_s21, %s7313_s22  }
  0x13   :  { %s7262_s27 = scalar_lea.hbm %s8833_s4, 4480 }
  0x14   :  { %p7263_p8 = scmp.ne.s32.totalorder %s8833_s4, %s7262_s27  ;;  %p7266_p9 = scmp.lt.u32.totalorder %s7262_s27, %s8833_s4 }
  0x16   :  { %p7268_p10 = pnand %p7266_p9, %p7263_p8 }
  0x18   :  { %7271 = shalt.err (!%p7268_p10)
}
  0x19   :  { %s7272_s13 = scalar_lea.vmem %s7368_s12, 4480  ;;  %p7277_p12 = scmp.lt.s32.totalorder %s7368_s12, %s7368_s12 }
  0x1a   :  { %p7273_p11 = scmp.ne.s32.totalorder %s7368_s12, %s7272_s13  ;;  %p7278_p13 = scmp.lt.s32.totalorder %s7272_s13, %s7272_s13 }
  0x1c   :  { %p7279_p0 = por %p7278_p13, %p7277_p12 }
  0x1e   :  { %p7280_p1 = pnand %p7279_p0, %p7273_p11 }
  0x20   :  { %7283 = shalt.err (!%p7280_p1)
}
  0x21   :  { %35 = dma.hbm_to_vmem [thread:$0]  %s8833_s4, 4480, %s7368_s12, [#allocation3], %s7312_s21, %s7312_s21, %s7313_s22  }
  0x22   :  { %s7314_s14 = smov [#allocation6]   ;;  %s7284_s18 = scalar_lea.hbm %s8836_s7, 3200 }
  0x23   :  { %s55_s15 = sshll.u32 %s7314_s14, 4  ;;  %p7285_p2 = scmp.ne.s32.totalorder %s8836_s7, %s7284_s18  ;;  %s56_s15 = int_to_ptr.vmem [resolvable:$true] %s55_s15 }
  0x24   :  { %p7288_p3 = scmp.lt.u32.totalorder %s7284_s18, %s8836_s7 }
  0x26   :  { %p7290_p4 = pnand %p7288_p3, %p7285_p2 }
  0x28   :  { %7293 = shalt.err (!%p7290_p4)
}
  0x29   :  { %s7294_s25 = scalar_lea.vmem %s56_s15, 3200  ;;  %p7299_p6 = scmp.lt.s32.totalorder %s56_s15, %s56_s15 }
  0x2a   :  { %p7295_p5 = scmp.ne.s32.totalorder %s56_s15, %s7294_s25  ;;  %p7300_p7 = scmp.lt.s32.totalorder %s7294_s25, %s7294_s25 }
  0x2c   :  { %p7301_p8 = por %p7300_p7, %p7299_p6 }
  0x2e   :  { %p7302_p9 = pnand %p7301_p8, %p7295_p5 }
  0x30   :  { %7305 = shalt.err (!%p7302_p9)
}
  0x31   :  { %61 = dma.hbm_to_vmem [thread:$0]  %s8836_s7, 3200, %s56_s15, [#allocation5], %s7312_s21, %s7312_s21, %s7313_s22  }
  0x32   :  { %7306 = dma.done.wait [#allocation3], 4480  }
  0x33   :  { %7307 = vsyncadd [#allocation3], 4294962816 }
  0x34   :  { %7308 = dma.done.wait [#allocation5], 7680  }
  0x35   :  { %7309 = vsyncadd [#allocation5], 4294959616  ;;  %v4439_v0 = vld [vmem:[%s8830_s1 + $0x60] sm:$0xff]  ;;  %v4440_v1 = vld [vmem:[%s8830_s1 + $0x68] sm:$0xff]  ;;  %vm142_vm0 = vcmask 785408   ;;  %vm2675_vm1 = vcmask 457728  }
  0x36   :  { %v4507_v2 = vld [vmem:[%s8831_s2 + $0x60] sm:$0xff]  ;;  %v6538_v3 = vpack.c.bf16 %v4440_v1, %v4439_v0  ;;  %v4508_v4 = vld [vmem:[%s8831_s2 + $0x68] sm:$0xff]  ;;  %v4441_v5 = vld [vmem:[%s8830_s1 + $0x70] sm:$0xff]  ;;  %vm7317_vm2 = vmmov 0   ;;  %vm4037_vm3 = vcmask 326656  }
  0x37   :  { %v4442_v6 = vld [vmem:[%s8830_s1 + $0x78] sm:$0xff]  ;;  %v6586_v7 = vpack.c.bf16 %v4508_v4, %v4507_v2  ;;  %v4509_v9 = vld [vmem:[%s8831_s2 + $0x70] sm:$0xff]  ;;  %v4443_v11 = vld [vmem:[%s8830_s1 + $0x80] sm:$0xff] }
  0x38   :  { %v6542_v8 = vpack.c.bf16 %v4442_v6, %v4441_v5  ;;  %v4510_v10 = vld [vmem:[%s8831_s2 + $0x78] sm:$0xff]  ;;  %6539 = vmatprep.subr.bf16.mxu0 %v6538_v3  ;;  %v4444_v13 = vld [vmem:[%s8830_s1 + $0x88] sm:$0xff]  ;;  %v4511_v14 = vld [vmem:[%s8831_s2 + $0x80] sm:$0xff] }
  0x39   :  { %v6590_v12 = vpack.c.bf16 %v4510_v10, %v4509_v9  ;;  %v4512_v15 = vld [vmem:[%s8831_s2 + $0x88] sm:$0xff]  ;;  %6587 = vmatprep.subr.bf16.mxu1 %v6586_v7  ;;  %6541 = vmatpush3.bf16.msra.mxu0 %v6538_v3  ;;  %v6546_v16 = vpack.c.bf16 %v4444_v13, %v4443_v11  ;;  %v4445_v18 = vld [vmem:[%s8830_s1 + $0x90] sm:$0xff]  ;;  %v4446_v19 = vld [vmem:[%s8830_s1 + $0x98] sm:$0xff] }
  0x3a   :  { %6589 = vmatpush3.bf16.msra.mxu1 %v6586_v7  ;;  %6543 = vmatprep.subr.bf16.mxu0 %v6542_v8  ;;  %v6594_v17 = vpack.c.bf16 %v4512_v15, %v4511_v14  ;;  %v4513_v20 = vld [vmem:[%s8831_s2 + $0x90] sm:$0xff]  ;;  %v4514_v21 = vld [vmem:[%s8831_s2 + $0x98] sm:$0xff]  ;;  %v7471_v22 = vld [vmem:[%s8829_s0 + $0x8] sm:$0xff]  ;;  %v6550_v23 = vpack.c.bf16 %v4446_v19, %v4445_v18 }
  0x3b   :  { %6591 = vmatprep.subr.bf16.mxu1 %v6590_v12  ;;  %v6598_v24 = vpack.c.bf16 %v4514_v21, %v4513_v20  ;;  %v4447_v25 = vld [vmem:[%s8830_s1 + $0xa0] sm:$0xff]  ;;  %v4448_v26 = vld [vmem:[%s8830_s1 + $0xa8] sm:$0xff]  ;;  %5547 = vmatprep.mubr.msk.f32.mxu0 %vm142_vm0, %v7471_v22  ;;  %v4449_v31 = vld [vmem:[%s8830_s1 + $0xb0] sm:$0xff] }
  0x3c   :  { %v4515_v27 = vld [vmem:[%s8831_s2 + $0xa0] sm:$0xff]  ;;  %v4516_v28 = vld [vmem:[%s8831_s2 + $0xa8] sm:$0xff]  ;;  %5679 = vmatprep.mubr.msk.f32.mxu1 %vm142_vm0, %v7471_v22  ;;  %v6554_v29 = vpack.c.bf16 %v4448_v26, %v4447_v25  ;;  %v4450_v32 = vld [vmem:[%s8830_s1 + $0xb8] sm:$0xff] }
  0x3d   :  { %6545 = vmatpush3.bf16.msra.mxu0 %v6542_v8  ;;  %v6602_v30 = vpack.c.bf16 %v4516_v28, %v4515_v27  ;;  %v4517_v33 = vld [vmem:[%s8831_s2 + $0xb0] sm:$0xff]  ;;  %v4518_v34 = vld [vmem:[%s8831_s2 + $0xb8] sm:$0xff]  ;;  %v6558_v35 = vpack.c.bf16 %v4450_v32, %v4449_v31  ;;  %v105_v37 = vld [vmem:[%s8830_s1] sm:$0xff] }
  0x3e   :  { %6593 = vmatpush3.bf16.msra.mxu1 %v6590_v12  ;;  %6547 = vmatprep.subr.bf16.mxu0 %v6546_v16  ;;  %v6606_v36 = vpack.c.bf16 %v4518_v34, %v4517_v33  ;;  %v106_v38 = vld [vmem:[%s8830_s1 + $0x8] sm:$0xff]  ;;  %v117_v39 = vld [vmem:[%s8831_s2] sm:$0xff]  ;;  %v107_v43 = vld [vmem:[%s8830_s1 + $0x10] sm:$0xff] }
  0x3f   :  { %6595 = vmatprep.subr.bf16.mxu1 %v6594_v17  ;;  %v118_v40 = vld [vmem:[%s8831_s2 + $0x8] sm:$0xff]  ;;  %v6562_v41 = vpack.c.bf16 %v106_v38, %v105_v37  ;;  %v108_v44 = vld [vmem:[%s8830_s1 + $0x18] sm:$0xff]  ;;  %v7522_v45 = vld [vmem:[%s8829_s0 + $0x10] sm:$0xff] }
  0x40   :  { %v6610_v42 = vpack.c.bf16 %v118_v40, %v117_v39  ;;  %v119_v46 = vld [vmem:[%s8831_s2 + $0x10] sm:$0xff]  ;;  %v120_v47 = vld [vmem:[%s8831_s2 + $0x18] sm:$0xff]  ;;  %v6566_v49 = vpack.c.bf16 %v108_v44, %v107_v43  ;;  %v109_v51 = vld [vmem:[%s8830_s1 + $0x20] sm:$0xff] }
  0x41   :  { %6549 = vmatpush3.bf16.msra.mxu0 %v6546_v16  ;;  %v7533_v48 = vld [vmem:[%s8829_s0 + $0x18] sm:$0xff]  ;;  %v6614_v50 = vpack.c.bf16 %v120_v47, %v119_v46  ;;  %v110_v52 = vld [vmem:[%s8830_s1 + $0x28] sm:$0xff]  ;;  %v7548_v53 = vld [vmem:[%s8829_s0 + $0x20] sm:$0xff] }
  0x42   :  { %6597 = vmatpush3.bf16.msra.mxu1 %v6594_v17  ;;  %6551 = vmatprep.subr.bf16.mxu0 %v6550_v23  ;;  %v121_v54 = vld [vmem:[%s8831_s2 + $0x20] sm:$0xff]  ;;  %v122_v55 = vld [vmem:[%s8831_s2 + $0x28] sm:$0xff]  ;;  %v6570_v57 = vpack.c.bf16 %v110_v52, %v109_v51  ;;  %v111_v59 = vld [vmem:[%s8830_s1 + $0x30] sm:$0xff] }
  0x43   :  { %6599 = vmatprep.subr.bf16.mxu1 %v6598_v24  ;;  %v7561_v56 = vld [vmem:[%s8829_s0 + $0x28] sm:$0xff]  ;;  %v6618_v58 = vpack.c.bf16 %v122_v55, %v121_v54  ;;  %v112_v60 = vld [vmem:[%s8830_s1 + $0x38] sm:$0xff]  ;;  %v7580_v61 = vld [vmem:[%s8829_s0 + $0x30] sm:$0xff] }
  0x44   :  { %v123_v62 = vld [vmem:[%s8831_s2 + $0x30] sm:$0xff]  ;;  %v124_v63 = vld [vmem:[%s8831_s2 + $0x38] sm:$0xff]  ;;  %v6574_v1 = vpack.c.bf16 %v112_v60, %v111_v59  ;;  %v113_v3 = vld [vmem:[%s8830_s1 + $0x40] sm:$0xff] }
  0x45   :  { %6553 = vmatpush3.bf16.msra.mxu0 %v6550_v23  ;;  %v7593_v0 = vld [vmem:[%s8829_s0 + $0x38] sm:$0xff]  ;;  %v6622_v2 = vpack.c.bf16 %v124_v63, %v123_v62  ;;  %v114_v4 = vld [vmem:[%s8830_s1 + $0x48] sm:$0xff]  ;;  %v7610_v5 = vld [vmem:[%s8829_s0 + $0x40] sm:$0xff] }
  0x46   :  { %6601 = vmatpush3.bf16.msra.mxu1 %v6598_v24  ;;  %6555 = vmatprep.subr.bf16.mxu0 %v6554_v29  ;;  %v125_v6 = vld [vmem:[%s8831_s2 + $0x40] sm:$0xff]  ;;  %v126_v7 = vld [vmem:[%s8831_s2 + $0x48] sm:$0xff]  ;;  %v6578_v9 = vpack.c.bf16 %v114_v4, %v113_v3  ;;  %v115_v11 = vld [vmem:[%s8830_s1 + $0x50] sm:$0xff] }
  0x47   :  { %6603 = vmatprep.subr.bf16.mxu1 %v6602_v30  ;;  %v7623_v8 = vld [vmem:[%s8829_s0 + $0x48] sm:$0xff]  ;;  %v6626_v10 = vpack.c.bf16 %v126_v7, %v125_v6  ;;  %v116_v12 = vld [vmem:[%s8830_s1 + $0x58] sm:$0xff]  ;;  %v7640_v13 = vld [vmem:[%s8829_s0 + $0x50] sm:$0xff] }
  0x48   :  { %v127_v14 = vld [vmem:[%s8831_s2 + $0x50] sm:$0xff]  ;;  %v128_v15 = vld [vmem:[%s8831_s2 + $0x58] sm:$0xff]  ;;  %v6582_v17 = vpack.c.bf16 %v116_v12, %v115_v11  ;;  %v4575_v19 = vld [vmem:[%s8830_s1 + $0xc0] sm:$0xff] }
  0x49   :  { %6557 = vmatpush3.bf16.msra.mxu0 %v6554_v29  ;;  %v7653_v16 = vld [vmem:[%s8829_s0 + $0x58] sm:$0xff]  ;;  %v6630_v18 = vpack.c.bf16 %v128_v15, %v127_v14  ;;  %v4576_v20 = vld [vmem:[%s8830_s1 + $0xc8] sm:$0xff]  ;;  %v7670_v21 = vld [vmem:[%s8829_s0 + $0x60] sm:$0xff] }
  0x4a   :  { %6605 = vmatpush3.bf16.msra.mxu1 %v6602_v30  ;;  %6559 = vmatprep.subr.bf16.mxu0 %v6558_v35  ;;  %v4615_v23 = vld [vmem:[%s8831_s2 + $0xc0] sm:$0xff]  ;;  %v4616_v24 = vld [vmem:[%s8831_s2 + $0xc8] sm:$0xff]  ;;  %v7685_v26 = vpack.c.bf16 %v4576_v20, %v4575_v19  ;;  %v7698_v28 = vld [vmem:[%s8829_s0 + $0x70] sm:$0xff] }
  0x4b   :  { %6607 = vmatprep.subr.bf16.mxu1 %v6606_v36  ;;  %v7683_v25 = vld [vmem:[%s8829_s0 + $0x68] sm:$0xff]  ;;  %v7689_v27 = vpack.c.bf16 %v4616_v24, %v4615_v23  ;;  %v7705_v29 = vld [vmem:[%s8829_s0 + $0x78] sm:$0xff]  ;;  %v7718_v30 = vld [vmem:[%s8829_s0 + $0x80] sm:$0xff] }
  0x4c   :  { %v7725_v31 = vld [vmem:[%s8829_s0 + $0x88] sm:$0xff]  ;;  %v7736_v32 = vld [vmem:[%s8829_s0 + $0x90] sm:$0xff]  ;;  %v7743_v33 = vld [vmem:[%s8829_s0 + $0x98] sm:$0xff] }
  0x4d   :  { %6561 = vmatpush3.bf16.msra.mxu0 %v6558_v35  ;;  %v7754_v34 = vld [vmem:[%s8829_s0 + $0xa0] sm:$0xff]  ;;  %v7761_v35 = vld [vmem:[%s8829_s0 + $0xa8] sm:$0xff]  ;;  %v7779_v37 = vld [vmem:[%s8829_s0 + $0xb8] sm:$0xff] }
  0x4e   :  { %6609 = vmatpush3.bf16.msra.mxu1 %v6606_v36  ;;  %6563 = vmatprep.subr.bf16.mxu0 %v6562_v41  ;;  %v7772_v36 = vld [vmem:[%s8829_s0 + $0xb0] sm:$0xff]  ;;  %v7790_v38 = vld [vmem:[%s8829_s0 + $0xc0] sm:$0xff]  ;;  %v7797_v39 = vld [vmem:[%s8829_s0 + $0xc8] sm:$0xff] }
  0x4f   :  { %6611 = vmatprep.subr.bf16.mxu1 %v6610_v42  ;;  %v7808_v40 = vld [vmem:[%s8829_s0 + $0xd0] sm:$0xff]  ;;  %v73_v43 = vld [vmem:[%s8829_s0] sm:$0xff]  ;;  %v4578_v46 = vld [vmem:[%s8830_s1 + $0xd8] sm:$0xff] }
  0x50   :  { %5548 = vmatmul.mubr.msk.f32.vlgmr.msra.gmra.mrb[0].mxu0 %vm142_vm0, %v7522_v45  ;;  %v4577_v44 = vld [vmem:[%s8830_s1 + $0xd0] sm:$0xff]  ;;  %v4579_v52 = vld [vmem:[%s8830_s1 + $0xe0] sm:$0xff]  ;;  %v4580_v54 = vld [vmem:[%s8830_s1 + $0xe8] sm:$0xff] }
  0x51   :  { %5680 = vmatmul.mubr.msk.f32.vlgmr.msra.gmra.mrb[0].mxu1 %vm142_vm0, %v7522_v45  ;;  %6565 = vmatpush3.bf16.msra.mxu0 %v6562_v41  ;;  %v7815_v41 = vld [vmem:[%s8829_s0 + $0xd8] sm:$0xff]  ;;  %v4617_v47 = vld [vmem:[%s8831_s2 + $0xd0] sm:$0xff]  ;;  %v4619_v55 = vld [vmem:[%s8831_s2 + $0xe0] sm:$0xff] }
  0x52   :  { %6613 = vmatpush3.bf16.msra.mxu1 %v6610_v42  ;;  %5550 = vmatprep.mubr.msk.f32.mxu0 %vm142_vm0, %v7533_v48  ;;  %v7826_v42 = vld [vmem:[%s8829_s0 + $0xe0] sm:$0xff]  ;;  %v4581_v59 = vld [vmem:[%s8830_s1 + $0xf0] sm:$0xff]  ;;  %v4582_v60 = vld [vmem:[%s8830_s1 + $0xf8] sm:$0xff] }
  0x53   :  { %5682 = vmatprep.mubr.msk.f32.mxu1 %vm142_vm0, %v7533_v48  ;;  %6567 = vmatprep.subr.bf16.mxu0 %v6566_v49  ;;  %v4621_v62 = vld [vmem:[%s8831_s2 + $0xf0] sm:$0xff]  ;;  %v4622_v63 = vld [vmem:[%s8831_s2 + $0xf8] sm:$0xff]  ;;  %v4583_v3 = vld [vmem:[%s8830_s1 + $0x100] sm:$0xff] }
  0x54   :  { %5551 = vmatmul.mubr.msk.f32.gmra.mrb[2].mxu0 %vm142_vm0, %v7548_v53  ;;  %6615 = vmatprep.subr.bf16.mxu1 %v6614_v50  ;;  %v4584_v4 = vld [vmem:[%s8830_s1 + $0x108] sm:$0xff]  ;;  %v4623_v6 = vld [vmem:[%s8831_s2 + $0x100] sm:$0xff]  ;;  %v4585_v11 = vld [vmem:[%s8830_s1 + $0x110] sm:$0xff] }
  0x55   :  { %5683 = vmatmul.mubr.msk.f32.gmra.mrb[2].mxu1 %vm142_vm0, %v7548_v53  ;;  %5553 = vmatprep.mubr.msk.f32.mxu0 %vm142_vm0, %v7561_v56  ;;  %v4624_v7 = vld [vmem:[%s8831_s2 + $0x108] sm:$0xff]  ;;  %v4586_v12 = vld [vmem:[%s8830_s1 + $0x118] sm:$0xff]  ;;  %v4625_v14 = vld [vmem:[%s8831_s2 + $0x110] sm:$0xff] }
  0x56   :  { %5685 = vmatprep.mubr.msk.f32.mxu1 %vm142_vm0, %v7561_v56  ;;  %6569 = vmatpush3.bf16.msra.mxu0 %v6566_v49  ;;  %v4618_v49 = vld [vmem:[%s8831_s2 + $0xd8] sm:$0xff]  ;;  %v4655_v19 = vld [vmem:[%s8830_s1 + $0x120] sm:$0xff]  ;;  %v4656_v20 = vld [vmem:[%s8830_s1 + $0x128] sm:$0xff] }
  0x57   :  { %6617 = vmatpush3.bf16.msra.mxu1 %v6614_v50  ;;  %6571 = vmatprep.subr.bf16.mxu0 %v6570_v57  ;;  %v6638_v50 = vpack.c.bf16 %v4578_v46, %v4577_v44  ;;  %v6662_v51 = vpack.c.bf16 %v4618_v49, %v4617_v47  ;;  %v4626_v15 = vld [vmem:[%s8831_s2 + $0x118] sm:$0xff]  ;;  %v4695_v23 = vld [vmem:[%s8831_s2 + $0x120] sm:$0xff]  ;;  %v4696_v24 = vld [vmem:[%s8831_s2 + $0x128] sm:$0xff] }
  0x58   :  { %5554 = vmatmul.mubr.msk.f32.gmra.mrb[4].mxu0 %vm142_vm0, %v7580_v61  ;;  %6619 = vmatprep.subr.bf16.mxu1 %v6618_v58  ;;  %v4658_v44 = vld [vmem:[%s8830_s1 + $0x138] sm:$0xff]  ;;  %v4697_v46 = vld [vmem:[%s8831_s2 + $0x130] sm:$0xff] }
  0x59   :  { %5686 = vmatmul.mubr.msk.f32.gmra.mrb[4].mxu1 %vm142_vm0, %v7580_v61  ;;  %5556 = vmatprep.mubr.msk.f32.mxu0 %vm142_vm0, %v7593_v0  ;;  %v4698_v47 = vld [vmem:[%s8831_s2 + $0x138] sm:$0xff] }
  0x5a   :  { %5688 = vmatprep.mubr.msk.f32.mxu1 %vm142_vm0, %v7593_v0  ;;  %6573 = vmatpush3.bf16.msra.mxu0 %v6570_v57  ;;  %v4620_v57 = vld [vmem:[%s8831_s2 + $0xe8] sm:$0xff] }
  0x5b   :  { %6621 = vmatpush3.bf16.msra.mxu1 %v6618_v58  ;;  %6575 = vmatprep.subr.bf16.mxu0 %v6574_v1  ;;  %v6666_v58 = vpack.c.bf16 %v4620_v57, %v4619_v55 }
  0x5c   :  { %5557 = vmatmul.mubr.msk.f32.gmra.mrb[6].mxu0 %vm142_vm0, %v7610_v5  ;;  %6623 = vmatprep.subr.bf16.mxu1 %v6622_v2 }
  0x5d   :  { %5689 = vmatmul.mubr.msk.f32.gmra.mrb[6].mxu1 %vm142_vm0, %v7610_v5  ;;  %5559 = vmatprep.mubr.msk.f32.mxu0 %vm142_vm0, %v7623_v8 }
  0x5e   :  { %5691 = vmatprep.mubr.msk.f32.mxu1 %vm142_vm0, %v7623_v8  ;;  %6577 = vmatpush3.bf16.msra.mxu0 %v6574_v1  ;;  %v6646_v1 = vpack.c.bf16 %v4582_v60, %v4581_v59  ;;  %v4701_v59 = vld [vmem:[%s8831_s2 + $0x150] sm:$0xff]  ;;  %v4702_v60 = vld [vmem:[%s8831_s2 + $0x158] sm:$0xff] }
  0x5f   :  { %6625 = vmatpush3.bf16.msra.mxu1 %v6622_v2  ;;  %6579 = vmatprep.subr.bf16.mxu0 %v6578_v9  ;;  %v6670_v2 = vpack.c.bf16 %v4622_v63, %v4621_v62  ;;  %v6718_v63 = vpack.c.bf16 %v4702_v60, %v4701_v59 }
  0x60   :  { %5560 = vmatmul.mubr.msk.f32.gmra.mrb[8].mxu0 %vm142_vm0, %v7640_v13  ;;  %6627 = vmatprep.subr.bf16.mxu1 %v6626_v10 }
  0x61   :  { %5692 = vmatmul.mubr.msk.f32.gmra.mrb[8].mxu1 %vm142_vm0, %v7640_v13  ;;  %5562 = vmatprep.mubr.msk.f32.mxu0 %vm142_vm0, %v7653_v16 }
  0x62   :  { %5694 = vmatprep.mubr.msk.f32.mxu1 %vm142_vm0, %v7653_v16  ;;  %6581 = vmatpush3.bf16.msra.mxu0 %v6578_v9  ;;  %v6650_v9 = vpack.c.bf16 %v4584_v4, %v4583_v3  ;;  %v4703_v3 = vld [vmem:[%s8831_s2 + $0x160] sm:$0xff]  ;;  %v4704_v4 = vld [vmem:[%s8831_s2 + $0x168] sm:$0xff] }
  0x63   :  { %6629 = vmatpush3.bf16.msra.mxu1 %v6626_v10  ;;  %6583 = vmatprep.subr.bf16.mxu0 %v6582_v17  ;;  %v6674_v10 = vpack.c.bf16 %v4624_v7, %v4623_v6  ;;  %v6722_v7 = vpack.c.bf16 %v4704_v4, %v4703_v3 }
  0x64   :  { %5563 = vmatmul.mubr.msk.f32.gmra.mrb[10].mxu0 %vm142_vm0, %v7670_v21  ;;  %6631 = vmatprep.subr.bf16.mxu1 %v6630_v18 }
  0x65   :  { %5695 = vmatmul.mubr.msk.f32.gmra.mrb[10].mxu1 %vm142_vm0, %v7670_v21  ;;  %5565 = vmatprep.mubr.msk.f32.mxu0 %vm142_vm0, %v7683_v25 }
  0x66   :  { %5697 = vmatprep.mubr.msk.f32.mxu1 %vm142_vm0, %v7683_v25  ;;  %6585 = vmatpush3.bf16.msra.mxu0 %v6582_v17  ;;  %v6654_v17 = vpack.c.bf16 %v4586_v12, %v4585_v11  ;;  %v4705_v11 = vld [vmem:[%s8831_s2 + $0x170] sm:$0xff]  ;;  %v4706_v12 = vld [vmem:[%s8831_s2 + $0x178] sm:$0xff] }
  0x67   :  { %6633 = vmatpush3.bf16.msra.mxu1 %v6630_v18  ;;  %6635 = vmatprep.subr.bf16.mxu0 %v7685_v26  ;;  %v6678_v18 = vpack.c.bf16 %v4626_v15, %v4625_v14  ;;  %v6726_v15 = vpack.c.bf16 %v4706_v12, %v4705_v11 }
  0x68   :  { %5566 = vmatmul.mubr.msk.f32.gmra.mrb[12].mxu0 %vm142_vm0, %v7698_v28  ;;  %6659 = vmatprep.subr.bf16.mxu1 %v7689_v27 }
  0x69   :  { %5698 = vmatmul.mubr.msk.f32.gmra.mrb[12].mxu1 %vm142_vm0, %v7698_v28  ;;  %5568 = vmatprep.mubr.msk.f32.mxu0 %vm142_vm0, %v7705_v29 }
  0x6a   :  { %5700 = vmatprep.mubr.msk.f32.mxu1 %vm142_vm0, %v7705_v29 }
  0x6c   :  { %5569 = vmatmul.mubr.msk.f32.gmra.mrb[14].mxu0 %vm142_vm0, %v7718_v30 }
  0x6d   :  { %5701 = vmatmul.mubr.msk.f32.gmra.mrb[14].mxu1 %vm142_vm0, %v7718_v30  ;;  %5571 = vmatprep.mubr.msk.f32.mxu0 %vm142_vm0, %v7725_v31 }
  0x6e   :  { %5703 = vmatprep.mubr.msk.f32.mxu1 %vm142_vm0, %v7725_v31 }
  0x70   :  { %5572 = vmatmul.mubr.msk.f32.gmra.mrb[16].mxu0 %vm142_vm0, %v7736_v32 }
  0x71   :  { %5704 = vmatmul.mubr.msk.f32.gmra.mrb[16].mxu1 %vm142_vm0, %v7736_v32  ;;  %5574 = vmatprep.mubr.msk.f32.mxu0 %vm142_vm0, %v7743_v33 }
  0x72   :  { %5706 = vmatprep.mubr.msk.f32.mxu1 %vm142_vm0, %v7743_v33 }
  0x74   :  { %5575 = vmatmul.mubr.msk.f32.gmra.mrb[18].mxu0 %vm142_vm0, %v7754_v34 }
  0x75   :  { %5707 = vmatmul.mubr.msk.f32.gmra.mrb[18].mxu1 %vm142_vm0, %v7754_v34  ;;  %5577 = vmatprep.mubr.msk.f32.mxu0 %vm142_vm0, %v7761_v35 }
  0x76   :  { %5709 = vmatprep.mubr.msk.f32.mxu1 %vm142_vm0, %v7761_v35 }
  0x78   :  { %5578 = vmatmul.mubr.msk.f32.gmra.mrb[20].mxu0 %vm142_vm0, %v7772_v36 }
  0x79   :  { %5710 = vmatmul.mubr.msk.f32.gmra.mrb[20].mxu1 %vm142_vm0, %v7772_v36  ;;  %5580 = vmatprep.mubr.msk.f32.mxu0 %vm142_vm0, %v7779_v37 }
  0x7a   :  { %5712 = vmatprep.mubr.msk.f32.mxu1 %vm142_vm0, %v7779_v37 }
  0x7c   :  { %5581 = vmatmul.mubr.msk.f32.gmra.mrb[22].mxu0 %vm142_vm0, %v7790_v38 }
  0x7d   :  { %5713 = vmatmul.mubr.msk.f32.gmra.mrb[22].mxu1 %vm142_vm0, %v7790_v38  ;;  %5583 = vmatprep.mubr.msk.f32.mxu0 %vm142_vm0, %v7797_v39 }
  0x7e   :  { %5715 = vmatprep.mubr.msk.f32.mxu1 %vm142_vm0, %v7797_v39 }
  0x80   :  { %5584 = vmatmul.mubr.msk.f32.gmra.mrb[24].mxu0 %vm142_vm0, %v7808_v40 }
  0x81   :  { %5716 = vmatmul.mubr.msk.f32.gmra.mrb[24].mxu1 %vm142_vm0, %v7808_v40  ;;  %5586 = vmatprep.mubr.msk.f32.mxu0 %vm142_vm0, %v7815_v41 }
  0x82   :  { %5718 = vmatprep.mubr.msk.f32.mxu1 %vm142_vm0, %v7815_v41 }
  0x84   :  { %5587 = vmatmul.mubr.msk.f32.gmra.mrb[26].mxu0 %vm142_vm0, %v7826_v42 }
  0x85   :  { %5719 = vmatmul.mubr.msk.f32.gmra.mrb[26].mxu1 %vm142_vm0, %v7826_v42  ;;  %5613 = vmatprep.mubr.msk.f32.mxu0 %vm142_vm0, %v73_v43 }
  0x86   :  { %5745 = vmatprep.mubr.msk.f32.mxu1 %vm142_vm0, %v73_v43  ;;  %v4657_v43 = vld [vmem:[%s8830_s1 + $0x130] sm:$0xff] }
  0x87   :  { %v6686_v49 = vpack.c.bf16 %v4658_v44, %v4657_v43  ;;  %v4738_v43 = vld [vmem:[%s8830_s1 + $0x198] sm:$0xff]  ;;  %v4777_v44 = vld [vmem:[%s8831_s2 + $0x190] sm:$0xff] }
  0x88   :  { %5614 = vmatmul.mubr.msk.f32.vlgmr.msra.gmra.mrb[0].mxu0 %vm142_vm0, %v7471_v22 }
  0x89   :  { %5746 = vmatmul.mubr.msk.f32.vlgmr.msra.gmra.mrb[0].mxu1 %vm142_vm0, %v7471_v22  ;;  %6637 = vmatpush3.bf16.msra.mxu0 %v7685_v26  ;;  %v6642_v22 = vpack.c.bf16 %v4580_v54, %v4579_v52  ;;  %v6682_v26 = vpack.c.bf16 %v4656_v20, %v4655_v19  ;;  %v4660_v52 = vld [vmem:[%s8830_s1 + $0x148] sm:$0xff]  ;;  %v4775_v19 = vld [vmem:[%s8831_s2 + $0x180] sm:$0xff] }
  0x8a   :  { %6661 = vmatpush3.bf16.msra.mxu1 %v7689_v27  ;;  %5616 = vmatprep.mubr.msk.f32.mxu0 %vm142_vm0, %v7522_v45  ;;  %v6706_v27 = vpack.c.bf16 %v4696_v24, %v4695_v23  ;;  %v4700_v54 = vld [vmem:[%s8831_s2 + $0x148] sm:$0xff] }
  0x8b   :  { %5748 = vmatprep.mubr.msk.f32.mxu1 %vm142_vm0, %v7522_v45  ;;  %6639 = vmatprep.subr.bf16.mxu0 %v6638_v50  ;;  %v4776_v20 = vld [vmem:[%s8831_s2 + $0x188] sm:$0xff] }
  0x8c   :  { %5617 = vmatmul.mubr.msk.f32.gmra.mrb[2].mxu0 %vm142_vm0, %v7533_v48  ;;  %6663 = vmatprep.subr.bf16.mxu1 %v6662_v51  ;;  %v6754_v24 = vpack.c.bf16 %v4776_v20, %v4775_v19 }
  0x8d   :  { %5749 = vmatmul.mubr.msk.f32.gmra.mrb[2].mxu1 %vm142_vm0, %v7533_v48  ;;  %5619 = vmatprep.mubr.msk.f32.mxu0 %vm142_vm0, %v7548_v53 }
  0x8e   :  { %5751 = vmatprep.mubr.msk.f32.mxu1 %vm142_vm0, %v7548_v53  ;;  %6641 = vmatpush3.bf16.msra.mxu0 %v6638_v50  ;;  %v6710_v50 = vpack.c.bf16 %v4698_v47, %v4697_v46  ;;  %v4778_v46 = vld [vmem:[%s8831_s2 + $0x198] sm:$0xff] }
  0x8f   :  { %6665 = vmatpush3.bf16.msra.mxu1 %v6662_v51  ;;  %6643 = vmatprep.subr.bf16.mxu0 %v6642_v22  ;;  %v4659_v51 = vld [vmem:[%s8830_s1 + $0x140] sm:$0xff] }
  0x90   :  { %5620 = vmatmul.mubr.msk.f32.gmra.mrb[4].mxu0 %vm142_vm0, %v7561_v56  ;;  %6667 = vmatprep.subr.bf16.mxu1 %v6666_v58  ;;  %v6690_v55 = vpack.c.bf16 %v4660_v52, %v4659_v51  ;;  %v4740_v51 = vld [vmem:[%s8830_s1 + $0x1a8] sm:$0xff] }
  0x91   :  { %5752 = vmatmul.mubr.msk.f32.gmra.mrb[4].mxu1 %vm142_vm0, %v7561_v56  ;;  %5622 = vmatprep.mubr.msk.f32.mxu0 %vm142_vm0, %v7580_v61  ;;  %v4780_v52 = vld [vmem:[%s8831_s2 + $0x1a8] sm:$0xff] }
  0x92   :  { %5754 = vmatprep.mubr.msk.f32.mxu1 %vm142_vm0, %v7580_v61  ;;  %6645 = vmatpush3.bf16.msra.mxu0 %v6642_v22  ;;  %v4661_v22 = vld [vmem:[%s8830_s1 + $0x150] sm:$0xff] }
  0x93   :  { %6669 = vmatpush3.bf16.msra.mxu1 %v6666_v58  ;;  %6647 = vmatprep.subr.bf16.mxu0 %v6646_v1  ;;  %v4662_v58 = vld [vmem:[%s8830_s1 + $0x158] sm:$0xff] }
  0x94   :  { %5623 = vmatmul.mubr.msk.f32.gmra.mrb[6].mxu0 %vm142_vm0, %v7593_v0  ;;  %6671 = vmatprep.subr.bf16.mxu1 %v6670_v2  ;;  %v6694_v62 = vpack.c.bf16 %v4662_v58, %v4661_v22  ;;  %v4781_v22 = vld [vmem:[%s8831_s2 + $0x1b0] sm:$0xff]  ;;  %v4782_v58 = vld [vmem:[%s8831_s2 + $0x1b8] sm:$0xff] }
  0x95   :  { %5755 = vmatmul.mubr.msk.f32.gmra.mrb[6].mxu1 %vm142_vm0, %v7593_v0  ;;  %5625 = vmatprep.mubr.msk.f32.mxu0 %vm142_vm0, %v7610_v5  ;;  %v6766_v60 = vpack.c.bf16 %v4782_v58, %v4781_v22 }
  0x96   :  { %5757 = vmatprep.mubr.msk.f32.mxu1 %vm142_vm0, %v7610_v5  ;;  %6649 = vmatpush3.bf16.msra.mxu0 %v6646_v1  ;;  %v4663_v1 = vld [vmem:[%s8830_s1 + $0x160] sm:$0xff] }
  0x97   :  { %6673 = vmatpush3.bf16.msra.mxu1 %v6670_v2  ;;  %6651 = vmatprep.subr.bf16.mxu0 %v6650_v9  ;;  %v4664_v2 = vld [vmem:[%s8830_s1 + $0x168] sm:$0xff] }
  0x98   :  { %5626 = vmatmul.mubr.msk.f32.gmra.mrb[8].mxu0 %vm142_vm0, %v7623_v8  ;;  %6675 = vmatprep.subr.bf16.mxu1 %v6674_v10  ;;  %v6698_v6 = vpack.c.bf16 %v4664_v2, %v4663_v1  ;;  %v4783_v1 = vld [vmem:[%s8831_s2 + $0x1c0] sm:$0xff]  ;;  %v4784_v2 = vld [vmem:[%s8831_s2 + $0x1c8] sm:$0xff] }
  0x99   :  { %5758 = vmatmul.mubr.msk.f32.gmra.mrb[8].mxu1 %vm142_vm0, %v7623_v8  ;;  %5628 = vmatprep.mubr.msk.f32.mxu0 %vm142_vm0, %v7640_v13  ;;  %v6770_v4 = vpack.c.bf16 %v4784_v2, %v4783_v1 }
  0x9a   :  { %5760 = vmatprep.mubr.msk.f32.mxu1 %vm142_vm0, %v7640_v13  ;;  %6653 = vmatpush3.bf16.msra.mxu0 %v6650_v9  ;;  %v4665_v9 = vld [vmem:[%s8830_s1 + $0x170] sm:$0xff] }
  0x9b   :  { %6677 = vmatpush3.bf16.msra.mxu1 %v6674_v10  ;;  %6655 = vmatprep.subr.bf16.mxu0 %v6654_v17  ;;  %v4666_v10 = vld [vmem:[%s8830_s1 + $0x178] sm:$0xff] }
  0x9c   :  { %5629 = vmatmul.mubr.msk.f32.gmra.mrb[10].mxu0 %vm142_vm0, %v7653_v16  ;;  %6679 = vmatprep.subr.bf16.mxu1 %v6678_v18  ;;  %v6702_v14 = vpack.c.bf16 %v4666_v10, %v4665_v9  ;;  %v4785_v9 = vld [vmem:[%s8831_s2 + $0x1d0] sm:$0xff]  ;;  %v4786_v10 = vld [vmem:[%s8831_s2 + $0x1d8] sm:$0xff] }
  0x9d   :  { %5761 = vmatmul.mubr.msk.f32.gmra.mrb[10].mxu1 %vm142_vm0, %v7653_v16  ;;  %5631 = vmatprep.mubr.msk.f32.mxu0 %vm142_vm0, %v7670_v21  ;;  %v6774_v12 = vpack.c.bf16 %v4786_v10, %v4785_v9 }
  0x9e   :  { %5763 = vmatprep.mubr.msk.f32.mxu1 %vm142_vm0, %v7670_v21  ;;  %6657 = vmatpush3.bf16.msra.mxu0 %v6654_v17  ;;  %v4735_v17 = vld [vmem:[%s8830_s1 + $0x180] sm:$0xff] }
  0x9f   :  { %6681 = vmatpush3.bf16.msra.mxu1 %v6678_v18  ;;  %6683 = vmatprep.subr.bf16.mxu0 %v6682_v26  ;;  %v4736_v18 = vld [vmem:[%s8830_s1 + $0x188] sm:$0xff] }
  0xa0   :  { %5632 = vmatmul.mubr.msk.f32.gmra.mrb[12].mxu0 %vm142_vm0, %v7683_v25  ;;  %6707 = vmatprep.subr.bf16.mxu1 %v6706_v27  ;;  %v6730_v23 = vpack.c.bf16 %v4736_v18, %v4735_v17  ;;  %v2940_v17 = vld [vmem:[#allocation4 + $0x38] sm:$0xff]  ;;  %v2941_v18 = vld [vmem:[#allocation4 + $0x40] sm:$0xff] }
  0xa1   :  { %5764 = vmatmul.mubr.msk.f32.gmra.mrb[12].mxu1 %vm142_vm0, %v7683_v25  ;;  %5634 = vmatprep.mubr.msk.f32.mxu0 %vm142_vm0, %v7698_v28  ;;  %v6802_v20 = vpack.c.bf16 %v2941_v18, %v2940_v17  ;;  %v2656_v17 = vld [vmem:[#allocation2 + $0x18] sm:$0xff]  ;;  %v2662_v18 = vld [vmem:[#allocation4 + $0x10] sm:$0xff] }
  0xa2   :  { %5766 = vmatprep.mubr.msk.f32.mxu1 %vm142_vm0, %v7698_v28 }
  0xa4   :  { %5635 = vmatmul.mubr.msk.f32.gmra.mrb[14].mxu0 %vm142_vm0, %v7705_v29 }
  0xa5   :  { %5767 = vmatmul.mubr.msk.f32.gmra.mrb[14].mxu1 %vm142_vm0, %v7705_v29  ;;  %5637 = vmatprep.mubr.msk.f32.mxu0 %vm142_vm0, %v7718_v30 }
  0xa6   :  { %5769 = vmatprep.mubr.msk.f32.mxu1 %vm142_vm0, %v7718_v30 }
  0xa8   :  { %5638 = vmatmul.mubr.msk.f32.gmra.mrb[16].mxu0 %vm142_vm0, %v7725_v31 }
  0xa9   :  { %5770 = vmatmul.mubr.msk.f32.gmra.mrb[16].mxu1 %vm142_vm0, %v7725_v31  ;;  %5640 = vmatprep.mubr.msk.f32.mxu0 %vm142_vm0, %v7736_v32 }
  0xaa   :  { %5772 = vmatprep.mubr.msk.f32.mxu1 %vm142_vm0, %v7736_v32 }
  0xac   :  { %5641 = vmatmul.mubr.msk.f32.gmra.mrb[18].mxu0 %vm142_vm0, %v7743_v33 }
  0xad   :  { %5773 = vmatmul.mubr.msk.f32.gmra.mrb[18].mxu1 %vm142_vm0, %v7743_v33  ;;  %5643 = vmatprep.mubr.msk.f32.mxu0 %vm142_vm0, %v7754_v34 }
  0xae   :  { %5775 = vmatprep.mubr.msk.f32.mxu1 %vm142_vm0, %v7754_v34 }
  0xb0   :  { %5644 = vmatmul.mubr.msk.f32.gmra.mrb[20].mxu0 %vm142_vm0, %v7761_v35 }
  0xb1   :  { %5776 = vmatmul.mubr.msk.f32.gmra.mrb[20].mxu1 %vm142_vm0, %v7761_v35  ;;  %5646 = vmatprep.mubr.msk.f32.mxu0 %vm142_vm0, %v7772_v36 }
  0xb2   :  { %5778 = vmatprep.mubr.msk.f32.mxu1 %vm142_vm0, %v7772_v36 }
  0xb4   :  { %5647 = vmatmul.mubr.msk.f32.gmra.mrb[22].mxu0 %vm142_vm0, %v7779_v37 }
  0xb5   :  { %5779 = vmatmul.mubr.msk.f32.gmra.mrb[22].mxu1 %vm142_vm0, %v7779_v37  ;;  %5649 = vmatprep.mubr.msk.f32.mxu0 %vm142_vm0, %v7790_v38 }
  0xb6   :  { %5781 = vmatprep.mubr.msk.f32.mxu1 %vm142_vm0, %v7790_v38 }
  0xb8   :  { %5650 = vmatmul.mubr.msk.f32.gmra.mrb[24].mxu0 %vm142_vm0, %v7797_v39 }
  0xb9   :  { %5782 = vmatmul.mubr.msk.f32.gmra.mrb[24].mxu1 %vm142_vm0, %v7797_v39  ;;  %5652 = vmatprep.mubr.msk.f32.mxu0 %vm142_vm0, %v7808_v40 }
  0xba   :  { %5784 = vmatprep.mubr.msk.f32.mxu1 %vm142_vm0, %v7808_v40 }
  0xbc   :  { %5653 = vmatmul.mubr.msk.f32.gmra.mrb[26].mxu0 %vm142_vm0, %v7815_v41 }
  0xbd   :  { %5785 = vmatmul.mubr.msk.f32.gmra.mrb[26].mxu1 %vm142_vm0, %v7815_v41  ;;  %5811 = vmatprep.mubr.msk.f32.mxu0 %vm142_vm0, %v7522_v45 }
  0xbe   :  { %5877 = vmatprep.mubr.msk.f32.mxu1 %vm142_vm0, %v7522_v45  ;;  %v4699_v45 = vld [vmem:[%s8831_s2 + $0x140] sm:$0xff] }
  0xbf   :  { %v6714_v57 = vpack.c.bf16 %v4700_v54, %v4699_v45 }
  0xc0   :  { %5812 = vmatmul.mubr.msk.f32.vlgmr.msra.gmra.mrb[0].mxu0 %vm142_vm0, %v7533_v48 }
  0xc1   :  { %5878 = vmatmul.mubr.msk.f32.vlgmr.msra.gmra.mrb[0].mxu1 %vm142_vm0, %v7533_v48  ;;  %6685 = vmatpush3.bf16.msra.mxu0 %v6682_v26  ;;  %v8202_v26 = vld [vmem:[%s8829_s0 + $0xe8] sm:$0xff] }
  0xc2   :  { %6709 = vmatpush3.bf16.msra.mxu1 %v6706_v27  ;;  %5814 = vmatprep.mubr.msk.f32.mxu0 %vm142_vm0, %v7548_v53  ;;  %v4737_v27 = vld [vmem:[%s8830_s1 + $0x190] sm:$0xff] }
  0xc3   :  { %5880 = vmatprep.mubr.msk.f32.mxu1 %vm142_vm0, %v7548_v53  ;;  %6687 = vmatprep.subr.bf16.mxu0 %v6686_v49  ;;  %v6734_v47 = vpack.c.bf16 %v4738_v43, %v4737_v27  ;;  %v2671_v27 = vld [vmem:[#allocation2 + $0x50] sm:$0xff]  ;;  %v2942_v43 = vld [vmem:[#allocation4 + $0x48] sm:$0xff] }
  0xc4   :  { %5815 = vmatmul.mubr.msk.f32.gmra.mrb[2].mxu0 %vm142_vm0, %v7561_v56  ;;  %6711 = vmatprep.subr.bf16.mxu1 %v6710_v50 }
  0xc5   :  { %5881 = vmatmul.mubr.msk.f32.gmra.mrb[2].mxu1 %vm142_vm0, %v7561_v56  ;;  %5817 = vmatprep.mubr.msk.f32.mxu0 %vm142_vm0, %v7580_v61 }
  0xc6   :  { %5883 = vmatprep.mubr.msk.f32.mxu1 %vm142_vm0, %v7580_v61  ;;  %6689 = vmatpush3.bf16.msra.mxu0 %v6686_v49  ;;  %v6758_v49 = vpack.c.bf16 %v4778_v46, %v4777_v44  ;;  %v2943_v44 = vld [vmem:[#allocation4 + $0x50] sm:$0xff] }
  0xc7   :  { %6713 = vmatpush3.bf16.msra.mxu1 %v6710_v50  ;;  %6691 = vmatprep.subr.bf16.mxu0 %v6690_v55  ;;  %v4739_v50 = vld [vmem:[%s8830_s1 + $0x1a0] sm:$0xff] }
  0xc8   :  { %5818 = vmatmul.mubr.msk.f32.gmra.mrb[4].mxu0 %vm142_vm0, %v7593_v0  ;;  %6715 = vmatprep.subr.bf16.mxu1 %v6714_v57  ;;  %v6738_v45 = vpack.c.bf16 %v4740_v51, %v4739_v50 }
  0xc9   :  { %5884 = vmatmul.mubr.msk.f32.gmra.mrb[4].mxu1 %vm142_vm0, %v7593_v0  ;;  %5820 = vmatprep.mubr.msk.f32.mxu0 %vm142_vm0, %v7610_v5 }
  0xca   :  { %5886 = vmatprep.mubr.msk.f32.mxu1 %vm142_vm0, %v7610_v5  ;;  %6693 = vmatpush3.bf16.msra.mxu0 %v6690_v55  ;;  %v4741_v55 = vld [vmem:[%s8830_s1 + $0x1b0] sm:$0xff] }
  0xcb   :  { %6717 = vmatpush3.bf16.msra.mxu1 %v6714_v57  ;;  %6695 = vmatprep.subr.bf16.mxu0 %v6694_v62  ;;  %v4742_v57 = vld [vmem:[%s8830_s1 + $0x1b8] sm:$0xff] }
  0xcc   :  { %5821 = vmatmul.mubr.msk.f32.gmra.mrb[6].mxu0 %vm142_vm0, %v7623_v8  ;;  %6719 = vmatprep.subr.bf16.mxu1 %v6718_v63  ;;  %v6742_v59 = vpack.c.bf16 %v4742_v57, %v4741_v55 }
  0xcd   :  { %5887 = vmatmul.mubr.msk.f32.gmra.mrb[6].mxu1 %vm142_vm0, %v7623_v8  ;;  %5823 = vmatprep.mubr.msk.f32.mxu0 %vm142_vm0, %v7640_v13 }
  0xce   :  { %5889 = vmatprep.mubr.msk.f32.mxu1 %vm142_vm0, %v7640_v13  ;;  %6697 = vmatpush3.bf16.msra.mxu0 %v6694_v62  ;;  %v4743_v62 = vld [vmem:[%s8830_s1 + $0x1c0] sm:$0xff] }
  0xcf   :  { %6721 = vmatpush3.bf16.msra.mxu1 %v6718_v63  ;;  %6699 = vmatprep.subr.bf16.mxu0 %v6698_v6  ;;  %v4744_v63 = vld [vmem:[%s8830_s1 + $0x1c8] sm:$0xff] }
  0xd0   :  { %5824 = vmatmul.mubr.msk.f32.gmra.mrb[8].mxu0 %vm142_vm0, %v7653_v16  ;;  %6723 = vmatprep.subr.bf16.mxu1 %v6722_v7  ;;  %v6746_v3 = vpack.c.bf16 %v4744_v63, %v4743_v62 }
  0xd1   :  { %5890 = vmatmul.mubr.msk.f32.gmra.mrb[8].mxu1 %vm142_vm0, %v7653_v16  ;;  %5826 = vmatprep.mubr.msk.f32.mxu0 %vm142_vm0, %v7670_v21 }
  0xd2   :  { %5892 = vmatprep.mubr.msk.f32.mxu1 %vm142_vm0, %v7670_v21  ;;  %6701 = vmatpush3.bf16.msra.mxu0 %v6698_v6  ;;  %v4745_v6 = vld [vmem:[%s8830_s1 + $0x1d0] sm:$0xff] }
  0xd3   :  { %6725 = vmatpush3.bf16.msra.mxu1 %v6722_v7  ;;  %6703 = vmatprep.subr.bf16.mxu0 %v6702_v14  ;;  %v4746_v7 = vld [vmem:[%s8830_s1 + $0x1d8] sm:$0xff] }
  0xd4   :  { %5827 = vmatmul.mubr.msk.f32.gmra.mrb[10].mxu0 %vm142_vm0, %v7683_v25  ;;  %6727 = vmatprep.subr.bf16.mxu1 %v6726_v15  ;;  %v6750_v11 = vpack.c.bf16 %v4746_v7, %v4745_v6 }
  0xd5   :  { %5893 = vmatmul.mubr.msk.f32.gmra.mrb[10].mxu1 %vm142_vm0, %v7683_v25  ;;  %5829 = vmatprep.mubr.msk.f32.mxu0 %vm142_vm0, %v7698_v28 }
  0xd6   :  { %5895 = vmatprep.mubr.msk.f32.mxu1 %vm142_vm0, %v7698_v28  ;;  %6705 = vmatpush3.bf16.msra.mxu0 %v6702_v14  ;;  %v2668_v14 = vld [vmem:[#allocation2 + $0x38] sm:$0xff] }
  0xd7   :  { %6729 = vmatpush3.bf16.msra.mxu1 %v6726_v15  ;;  %6731 = vmatprep.subr.bf16.mxu0 %v6730_v23  ;;  %v2669_v15 = vld [vmem:[#allocation2 + $0x40] sm:$0xff] }
  0xd8   :  { %5830 = vmatmul.mubr.msk.f32.gmra.mrb[12].mxu0 %vm142_vm0, %v7705_v29  ;;  %6755 = vmatprep.subr.bf16.mxu1 %v6754_v24  ;;  %v6778_v19 = vpack.c.bf16 %v2669_v15, %v2668_v14 }
  0xd9   :  { %5896 = vmatmul.mubr.msk.f32.gmra.mrb[12].mxu1 %vm142_vm0, %v7705_v29  ;;  %5832 = vmatprep.mubr.msk.f32.mxu0 %vm142_vm0, %v7718_v30 }
  0xda   :  { %5898 = vmatprep.mubr.msk.f32.mxu1 %vm142_vm0, %v7718_v30 }
  0xdc   :  { %5833 = vmatmul.mubr.msk.f32.gmra.mrb[14].mxu0 %vm142_vm0, %v7725_v31 }
  0xdd   :  { %5899 = vmatmul.mubr.msk.f32.gmra.mrb[14].mxu1 %vm142_vm0, %v7725_v31  ;;  %5835 = vmatprep.mubr.msk.f32.mxu0 %vm142_vm0, %v7736_v32 }
  0xde   :  { %5901 = vmatprep.mubr.msk.f32.mxu1 %vm142_vm0, %v7736_v32 }
  0xe0   :  { %5836 = vmatmul.mubr.msk.f32.gmra.mrb[16].mxu0 %vm142_vm0, %v7743_v33 }
  0xe1   :  { %5902 = vmatmul.mubr.msk.f32.gmra.mrb[16].mxu1 %vm142_vm0, %v7743_v33  ;;  %5838 = vmatprep.mubr.msk.f32.mxu0 %vm142_vm0, %v7754_v34 }
  0xe2   :  { %5904 = vmatprep.mubr.msk.f32.mxu1 %vm142_vm0, %v7754_v34 }
  0xe4   :  { %5839 = vmatmul.mubr.msk.f32.gmra.mrb[18].mxu0 %vm142_vm0, %v7761_v35 }
  0xe5   :  { %5905 = vmatmul.mubr.msk.f32.gmra.mrb[18].mxu1 %vm142_vm0, %v7761_v35  ;;  %5841 = vmatprep.mubr.msk.f32.mxu0 %vm142_vm0, %v7772_v36 }
  0xe6   :  { %5907 = vmatprep.mubr.msk.f32.mxu1 %vm142_vm0, %v7772_v36 }
  0xe8   :  { %5842 = vmatmul.mubr.msk.f32.gmra.mrb[20].mxu0 %vm142_vm0, %v7779_v37 }
  0xe9   :  { %5908 = vmatmul.mubr.msk.f32.gmra.mrb[20].mxu1 %vm142_vm0, %v7779_v37  ;;  %5844 = vmatprep.mubr.msk.f32.mxu0 %vm142_vm0, %v7790_v38 }
  0xea   :  { %5910 = vmatprep.mubr.msk.f32.mxu1 %vm142_vm0, %v7790_v38 }
  0xec   :  { %5845 = vmatmul.mubr.msk.f32.gmra.mrb[22].mxu0 %vm142_vm0, %v7797_v39 }
  0xed   :  { %5911 = vmatmul.mubr.msk.f32.gmra.mrb[22].mxu1 %vm142_vm0, %v7797_v39  ;;  %5847 = vmatprep.mubr.msk.f32.mxu0 %vm142_vm0, %v7808_v40 }
  0xee   :  { %5913 = vmatprep.mubr.msk.f32.mxu1 %vm142_vm0, %v7808_v40 }
  0xf0   :  { %5848 = vmatmul.mubr.msk.f32.gmra.mrb[24].mxu0 %vm142_vm0, %v7815_v41 }
  0xf1   :  { %5914 = vmatmul.mubr.msk.f32.gmra.mrb[24].mxu1 %vm142_vm0, %v7815_v41  ;;  %5850 = vmatprep.mubr.msk.f32.mxu0 %vm142_vm0, %v7826_v42 }
  0xf2   :  { %5916 = vmatprep.mubr.msk.f32.mxu1 %vm142_vm0, %v7826_v42 }
  0xf4   :  { %5851 = vmatmul.mubr.msk.f32.gmra.mrb[26].mxu0 %vm142_vm0, %v8202_v26 }
  0xf5   :  { %5917 = vmatmul.mubr.msk.f32.gmra.mrb[26].mxu1 %vm142_vm0, %v8202_v26  ;;  %5943 = vmatprep.mubr.msk.f32.mxu0 %vm142_vm0, %v7533_v48 }
  0xf6   :  { %6009 = vmatprep.mubr.msk.f32.mxu1 %vm142_vm0, %v7533_v48  ;;  %v4779_v48 = vld [vmem:[%s8831_s2 + $0x1a0] sm:$0xff] }
  0xf7   :  { %v6762_v54 = vpack.c.bf16 %v4780_v52, %v4779_v48 }
  0xf8   :  { %5944 = vmatmul.mubr.msk.f32.vlgmr.msra.gmra.mrb[0].mxu0 %vm142_vm0, %v7548_v53 }
  0xf9   :  { %6010 = vmatmul.mubr.msk.f32.vlgmr.msra.gmra.mrb[0].mxu1 %vm142_vm0, %v7548_v53  ;;  %6733 = vmatpush3.bf16.msra.mxu0 %v6730_v23  ;;  %v8379_v23 = vld [vmem:[%s8829_s0 + $0xf0] sm:$0xff] }
  0xfa   :  { %6757 = vmatpush3.bf16.msra.mxu1 %v6754_v24  ;;  %5946 = vmatprep.mubr.msk.f32.mxu0 %vm142_vm0, %v7561_v56  ;;  %v2670_v24 = vld [vmem:[#allocation2 + $0x48] sm:$0xff] }
  0xfb   :  { %6012 = vmatprep.mubr.msk.f32.mxu1 %vm142_vm0, %v7561_v56  ;;  %6735 = vmatprep.subr.bf16.mxu0 %v6734_v47  ;;  %v6782_v46 = vpack.c.bf16 %v2671_v27, %v2670_v24 }
  0xfc   :  { %5947 = vmatmul.mubr.msk.f32.gmra.mrb[2].mxu0 %vm142_vm0, %v7580_v61  ;;  %6759 = vmatprep.subr.bf16.mxu1 %v6758_v49 }
  0xfd   :  { %6013 = vmatmul.mubr.msk.f32.gmra.mrb[2].mxu1 %vm142_vm0, %v7580_v61  ;;  %5949 = vmatprep.mubr.msk.f32.mxu0 %vm142_vm0, %v7593_v0 }
  0xfe   :  { %6015 = vmatprep.mubr.msk.f32.mxu1 %vm142_vm0, %v7593_v0  ;;  %6737 = vmatpush3.bf16.msra.mxu0 %v6734_v47  ;;  %v6806_v47 = vpack.c.bf16 %v2943_v44, %v2942_v43 }
  0xff   :  { %6761 = vmatpush3.bf16.msra.mxu1 %v6758_v49  ;;  %6739 = vmatprep.subr.bf16.mxu0 %v6738_v45 }
 0x100   :  { %5950 = vmatmul.mubr.msk.f32.gmra.mrb[4].mxu0 %vm142_vm0, %v7610_v5  ;;  %6763 = vmatprep.subr.bf16.mxu1 %v6762_v54 }
 0x101   :  { %6016 = vmatmul.mubr.msk.f32.gmra.mrb[4].mxu1 %vm142_vm0, %v7610_v5  ;;  %5952 = vmatprep.mubr.msk.f32.mxu0 %vm142_vm0, %v7623_v8 }
 0x102   :  { %6018 = vmatprep.mubr.msk.f32.mxu1 %vm142_vm0, %v7623_v8  ;;  %6741 = vmatpush3.bf16.msra.mxu0 %v6738_v45 }
 0x103   :  { %6765 = vmatpush3.bf16.msra.mxu1 %v6762_v54  ;;  %6743 = vmatprep.subr.bf16.mxu0 %v6742_v59 }
 0x104   :  { %5953 = vmatmul.mubr.msk.f32.gmra.mrb[6].mxu0 %vm142_vm0, %v7640_v13  ;;  %6767 = vmatprep.subr.bf16.mxu1 %v6766_v60 }
 0x105   :  { %6019 = vmatmul.mubr.msk.f32.gmra.mrb[6].mxu1 %vm142_vm0, %v7640_v13  ;;  %5955 = vmatprep.mubr.msk.f32.mxu0 %vm142_vm0, %v7653_v16 }
 0x106   :  { %6021 = vmatprep.mubr.msk.f32.mxu1 %vm142_vm0, %v7653_v16  ;;  %6745 = vmatpush3.bf16.msra.mxu0 %v6742_v59 }
 0x107   :  { %6769 = vmatpush3.bf16.msra.mxu1 %v6766_v60  ;;  %6747 = vmatprep.subr.bf16.mxu0 %v6746_v3 }
 0x108   :  { %5956 = vmatmul.mubr.msk.f32.gmra.mrb[8].mxu0 %vm142_vm0, %v7670_v21  ;;  %6771 = vmatprep.subr.bf16.mxu1 %v6770_v4 }
 0x109   :  { %6022 = vmatmul.mubr.msk.f32.gmra.mrb[8].mxu1 %vm142_vm0, %v7670_v21  ;;  %5958 = vmatprep.mubr.msk.f32.mxu0 %vm142_vm0, %v7683_v25 }
 0x10a   :  { %6024 = vmatprep.mubr.msk.f32.mxu1 %vm142_vm0, %v7683_v25  ;;  %6749 = vmatpush3.bf16.msra.mxu0 %v6746_v3 }
 0x10b   :  { %6773 = vmatpush3.bf16.msra.mxu1 %v6770_v4  ;;  %6751 = vmatprep.subr.bf16.mxu0 %v6750_v11 }
 0x10c   :  { %5959 = vmatmul.mubr.msk.f32.gmra.mrb[10].mxu0 %vm142_vm0, %v7698_v28  ;;  %6775 = vmatprep.subr.bf16.mxu1 %v6774_v12 }
 0x10d   :  { %6025 = vmatmul.mubr.msk.f32.gmra.mrb[10].mxu1 %vm142_vm0, %v7698_v28  ;;  %5961 = vmatprep.mubr.msk.f32.mxu0 %vm142_vm0, %v7705_v29 }
 0x10e   :  { %6027 = vmatprep.mubr.msk.f32.mxu1 %vm142_vm0, %v7705_v29  ;;  %6753 = vmatpush3.bf16.msra.mxu0 %v6750_v11  ;;  %v2655_v11 = vld [vmem:[#allocation2 + $0x10] sm:$0xff] }
 0x10f   :  { %6777 = vmatpush3.bf16.msra.mxu1 %v6774_v12  ;;  %6779 = vmatprep.subr.bf16.mxu0 %v6778_v19 }
 0x110   :  { %5962 = vmatmul.mubr.msk.f32.gmra.mrb[12].mxu0 %vm142_vm0, %v7718_v30  ;;  %6803 = vmatprep.subr.bf16.mxu1 %v6802_v20 }
 0x111   :  { %6028 = vmatmul.mubr.msk.f32.gmra.mrb[12].mxu1 %vm142_vm0, %v7718_v30  ;;  %5964 = vmatprep.mubr.msk.f32.mxu0 %vm142_vm0, %v7725_v31 }
 0x112   :  { %6030 = vmatprep.mubr.msk.f32.mxu1 %vm142_vm0, %v7725_v31 }
 0x114   :  { %5965 = vmatmul.mubr.msk.f32.gmra.mrb[14].mxu0 %vm142_vm0, %v7736_v32 }
 0x115   :  { %6031 = vmatmul.mubr.msk.f32.gmra.mrb[14].mxu1 %vm142_vm0, %v7736_v32  ;;  %5967 = vmatprep.mubr.msk.f32.mxu0 %vm142_vm0, %v7743_v33 }
 0x116   :  { %6033 = vmatprep.mubr.msk.f32.mxu1 %vm142_vm0, %v7743_v33 }
 0x118   :  { %5968 = vmatmul.mubr.msk.f32.gmra.mrb[16].mxu0 %vm142_vm0, %v7754_v34 }
 0x119   :  { %6034 = vmatmul.mubr.msk.f32.gmra.mrb[16].mxu1 %vm142_vm0, %v7754_v34  ;;  %5970 = vmatprep.mubr.msk.f32.mxu0 %vm142_vm0, %v7761_v35 }
 0x11a   :  { %6036 = vmatprep.mubr.msk.f32.mxu1 %vm142_vm0, %v7761_v35 }
 0x11c   :  { %5971 = vmatmul.mubr.msk.f32.gmra.mrb[18].mxu0 %vm142_vm0, %v7772_v36 }
 0x11d   :  { %6037 = vmatmul.mubr.msk.f32.gmra.mrb[18].mxu1 %vm142_vm0, %v7772_v36  ;;  %5973 = vmatprep.mubr.msk.f32.mxu0 %vm142_vm0, %v7779_v37 }
 0x11e   :  { %6039 = vmatprep.mubr.msk.f32.mxu1 %vm142_vm0, %v7779_v37 }
 0x120   :  { %5974 = vmatmul.mubr.msk.f32.gmra.mrb[20].mxu0 %vm142_vm0, %v7790_v38 }
 0x121   :  { %6040 = vmatmul.mubr.msk.f32.gmra.mrb[20].mxu1 %vm142_vm0, %v7790_v38  ;;  %5976 = vmatprep.mubr.msk.f32.mxu0 %vm142_vm0, %v7797_v39 }
 0x122   :  { %6042 = vmatprep.mubr.msk.f32.mxu1 %vm142_vm0, %v7797_v39 }
 0x124   :  { %5977 = vmatmul.mubr.msk.f32.gmra.mrb[22].mxu0 %vm142_vm0, %v7808_v40 }
 0x125   :  { %6043 = vmatmul.mubr.msk.f32.gmra.mrb[22].mxu1 %vm142_vm0, %v7808_v40  ;;  %5979 = vmatprep.mubr.msk.f32.mxu0 %vm142_vm0, %v7815_v41 }
 0x126   :  { %6045 = vmatprep.mubr.msk.f32.mxu1 %vm142_vm0, %v7815_v41 }
 0x128   :  { %5980 = vmatmul.mubr.msk.f32.gmra.mrb[24].mxu0 %vm142_vm0, %v7826_v42 }
 0x129   :  { %6046 = vmatmul.mubr.msk.f32.gmra.mrb[24].mxu1 %vm142_vm0, %v7826_v42  ;;  %5982 = vmatprep.mubr.msk.f32.mxu0 %vm142_vm0, %v8202_v26 }
 0x12a   :  { %6048 = vmatprep.mubr.msk.f32.mxu1 %vm142_vm0, %v8202_v26 }
 0x12c   :  { %5983 = vmatmul.mubr.msk.f32.gmra.mrb[26].mxu0 %vm142_vm0, %v8379_v23 }
 0x12d   :  { %6049 = vmatmul.mubr.msk.f32.gmra.mrb[26].mxu1 %vm142_vm0, %v8379_v23  ;;  %6075 = vmatprep.mubr.msk.f32.mxu0 %vm142_vm0, %v7548_v53 }
 0x12e   :  { %6141 = vmatprep.mubr.msk.f32.mxu1 %vm142_vm0, %v7548_v53  ;;  %v104_v53 = vld [vmem:[%s8829_s0 + $0xf8] sm:$0xff] }
 0x130   :  { %6076 = vmatmul.mubr.msk.f32.vlgmr.msra.gmra.mrb[0].mxu0 %vm142_vm0, %v7561_v56 }
 0x131   :  { %6142 = vmatmul.mubr.msk.f32.vlgmr.msra.gmra.mrb[0].mxu1 %vm142_vm0, %v7561_v56  ;;  %6078 = vmatprep.mubr.msk.f32.mxu0 %vm142_vm0, %v7580_v61  ;;  %v2672_v56 = vld [vmem:[#allocation2 + $0x58] sm:$0xff] }
 0x132   :  { %6144 = vmatprep.mubr.msk.f32.mxu1 %vm142_vm0, %v7580_v61  ;;  %6781 = vmatpush3.bf16.msra.mxu0 %v6778_v19  ;;  %v2673_v61 = vld [vmem:[#allocation2 + $0x60] sm:$0xff]  ;;  %v2663_v19 = vld [vmem:[#allocation4 + $0x18] sm:$0xff] }
 0x133   :  { %6805 = vmatpush3.bf16.msra.mxu1 %v6802_v20  ;;  %6783 = vmatprep.subr.bf16.mxu0 %v6782_v46 }
 0x134   :  { %6079 = vmatmul.mubr.msk.f32.gmra.mrb[2].mxu0 %vm142_vm0, %v7593_v0  ;;  %6807 = vmatprep.subr.bf16.mxu1 %v6806_v47 }
 0x135   :  { %6145 = vmatmul.mubr.msk.f32.gmra.mrb[2].mxu1 %vm142_vm0, %v7593_v0  ;;  %6081 = vmatprep.mubr.msk.f32.mxu0 %vm142_vm0, %v7610_v5  ;;  %v2944_v0 = vld [vmem:[#allocation4 + $0x58] sm:$0xff] }
 0x136   :  { %6147 = vmatprep.mubr.msk.f32.mxu1 %vm142_vm0, %v7610_v5  ;;  %6785 = vmatpush3.bf16.msra.mxu0 %v6782_v46  ;;  %v6786_v5 = vpack.c.bf16 %v2673_v61, %v2672_v56  ;;  %v6818_v56 = vpack.c.bf16 %v2663_v19, %v2662_v18  ;;  %v2657_v61 = vld [vmem:[#allocation2 + $0x20] sm:$0xff] }
 0x137   :  { %6809 = vmatpush3.bf16.msra.mxu1 %v6806_v47 }
 0x138   :  { %6082 = vmatmul.mubr.msk.f32.gmra.mrb[4].mxu0 %vm142_vm0, %v7623_v8  ;;  %6787 = vmatprep.subr.bf16.mxu0 %v6786_v5 }
 0x139   :  { %6148 = vmatmul.mubr.msk.f32.gmra.mrb[4].mxu1 %vm142_vm0, %v7623_v8  ;;  %6084 = vmatprep.mubr.msk.f32.mxu0 %vm142_vm0, %v7640_v13  ;;  %v2945_v8 = vld [vmem:[#allocation4 + $0x60] sm:$0xff] }
 0x13a   :  { %6150 = vmatprep.mubr.msk.f32.mxu1 %vm142_vm0, %v7640_v13  ;;  %v6810_v13 = vpack.c.bf16 %v2945_v8, %v2944_v0  ;;  %6789 = vmatpush3.bf16.msra.mxu0 %v6786_v5  ;;  %v2658_v0 = vld [vmem:[#allocation2 + $0x28] sm:$0xff] }
 0x13c   :  { %6085 = vmatmul.mubr.msk.f32.gmra.mrb[6].mxu0 %vm142_vm0, %v7653_v16  ;;  %6811 = vmatprep.subr.bf16.mxu1 %v6810_v13 }
 0x13d   :  { %6151 = vmatmul.mubr.msk.f32.gmra.mrb[6].mxu1 %vm142_vm0, %v7653_v16  ;;  %6087 = vmatprep.mubr.msk.f32.mxu0 %vm142_vm0, %v7670_v21  ;;  %v2674_v16 = vld [vmem:[#allocation2 + $0x68] sm:$0xff] }
 0x13e   :  { %6153 = vmatprep.mubr.msk.f32.mxu1 %vm142_vm0, %v7670_v21  ;;  %6813 = vmatpush3.bf16.msra.mxu1 %v6810_v13  ;;  %v2946_v21 = vld [vmem:[#allocation4 + $0x68] sm:$0xff] }
 0x13f   :  { %6195 = vmatprep.subr.mxu0 %v2674_v16  ;;  %6253 = vmatprep.subr.mxu1 %v2946_v21 }
 0x140   :  { %6088 = vmatmul.mubr.msk.f32.gmra.mrb[8].mxu0 %vm142_vm0, %v7683_v25 }
 0x141   :  { %6154 = vmatmul.mubr.msk.f32.gmra.mrb[8].mxu1 %vm142_vm0, %v7683_v25  ;;  %6090 = vmatprep.mubr.msk.f32.mxu0 %vm142_vm0, %v7698_v28  ;;  %v2653_v25 = vld [vmem:[#allocation2] sm:$0xff] }
 0x142   :  { %6156 = vmatprep.mubr.msk.f32.mxu1 %vm142_vm0, %v7698_v28  ;;  %6196 = vmatpush3.msra.mxu0 %v2674_v16  ;;  %v2654_v28 = vld [vmem:[#allocation2 + $0x8] sm:$0xff]  ;;  %v2664_v16 = vld [vmem:[#allocation4 + $0x20] sm:$0xff] }
 0x143   :  { %6254 = vmatpush3.msra.mxu1 %v2946_v21  ;;  %v2665_v21 = vld [vmem:[#allocation4 + $0x28] sm:$0xff] }
 0x144   :  { %6091 = vmatmul.mubr.msk.f32.gmra.mrb[10].mxu0 %vm142_vm0, %v7705_v29 }
 0x145   :  { %6157 = vmatmul.mubr.msk.f32.gmra.mrb[10].mxu1 %vm142_vm0, %v7705_v29  ;;  %6093 = vmatprep.mubr.msk.f32.mxu0 %vm142_vm0, %v7718_v30  ;;  %v2660_v29 = vld [vmem:[#allocation4] sm:$0xff] }
 0x146   :  { %6159 = vmatprep.mubr.msk.f32.mxu1 %vm142_vm0, %v7718_v30  ;;  %v8500_v30 = vpack.c.bf16 %v2654_v28, %v2653_v25 }
 0x148   :  { %6094 = vmatmul.mubr.msk.f32.gmra.mrb[12].mxu0 %vm142_vm0, %v7725_v31  ;;  %6791 = vmatprep.subr.bf16.mxu0 %v8500_v30 }
 0x149   :  { %6160 = vmatmul.mubr.msk.f32.gmra.mrb[12].mxu1 %vm142_vm0, %v7725_v31  ;;  %6096 = vmatprep.mubr.msk.f32.mxu0 %vm142_vm0, %v7736_v32  ;;  %v2661_v31 = vld [vmem:[#allocation4 + $0x8] sm:$0xff] }
 0x14a   :  { %6162 = vmatprep.mubr.msk.f32.mxu1 %vm142_vm0, %v7736_v32  ;;  %v8502_v32 = vpack.c.bf16 %v2661_v31, %v2660_v29 }
 0x14c   :  { %6097 = vmatmul.mubr.msk.f32.gmra.mrb[14].mxu0 %vm142_vm0, %v7743_v33  ;;  %6815 = vmatprep.subr.bf16.mxu1 %v8502_v32 }
 0x14d   :  { %6163 = vmatmul.mubr.msk.f32.gmra.mrb[14].mxu1 %vm142_vm0, %v7743_v33  ;;  %6099 = vmatprep.mubr.msk.f32.mxu0 %vm142_vm0, %v7754_v34 }
 0x14e   :  { %6165 = vmatprep.mubr.msk.f32.mxu1 %vm142_vm0, %v7754_v34 }
 0x150   :  { %6100 = vmatmul.mubr.msk.f32.gmra.mrb[16].mxu0 %vm142_vm0, %v7761_v35 }
 0x151   :  { %6166 = vmatmul.mubr.msk.f32.gmra.mrb[16].mxu1 %vm142_vm0, %v7761_v35  ;;  %6102 = vmatprep.mubr.msk.f32.mxu0 %vm142_vm0, %v7772_v36  ;;  %v8509_v35 = vld [vmem:[%s8832_s3] ss:$0 sm:$0xff] }
 0x152   :  { %6168 = vmatprep.mubr.msk.f32.mxu1 %vm142_vm0, %v7772_v36 }
 0x154   :  { %6103 = vmatmul.mubr.msk.f32.gmra.mrb[18].mxu0 %vm142_vm0, %v7779_v37 }
 0x155   :  { %6169 = vmatmul.mubr.msk.f32.gmra.mrb[18].mxu1 %vm142_vm0, %v7779_v37  ;;  %6105 = vmatprep.mubr.msk.f32.mxu0 %vm142_vm0, %v7790_v38 }
 0x156   :  { %6171 = vmatprep.mubr.msk.f32.mxu1 %vm142_vm0, %v7790_v38 }
 0x158   :  { %6106 = vmatmul.mubr.msk.f32.gmra.mrb[20].mxu0 %vm142_vm0, %v7797_v39 }
 0x159   :  { %6172 = vmatmul.mubr.msk.f32.gmra.mrb[20].mxu1 %vm142_vm0, %v7797_v39  ;;  %6108 = vmatprep.mubr.msk.f32.mxu0 %vm142_vm0, %v7808_v40 }
 0x15a   :  { %6174 = vmatprep.mubr.msk.f32.mxu1 %vm142_vm0, %v7808_v40 }
 0x15c   :  { %6109 = vmatmul.mubr.msk.f32.gmra.mrb[22].mxu0 %vm142_vm0, %v7815_v41 }
 0x15d   :  { %6175 = vmatmul.mubr.msk.f32.gmra.mrb[22].mxu1 %vm142_vm0, %v7815_v41  ;;  %6111 = vmatprep.mubr.msk.f32.mxu0 %vm142_vm0, %v7826_v42 }
 0x15e   :  { %6177 = vmatprep.mubr.msk.f32.mxu1 %vm142_vm0, %v7826_v42 }
 0x160   :  { %6112 = vmatmul.mubr.msk.f32.gmra.mrb[24].mxu0 %vm142_vm0, %v8202_v26 }
 0x161   :  { %6178 = vmatmul.mubr.msk.f32.gmra.mrb[24].mxu1 %vm142_vm0, %v8202_v26  ;;  %6114 = vmatprep.mubr.msk.f32.mxu0 %vm142_vm0, %v8379_v23 }
 0x162   :  { %6180 = vmatprep.mubr.msk.f32.mxu1 %vm142_vm0, %v8379_v23 }
 0x164   :  { %6115 = vmatmul.mubr.msk.f32.gmra.mrb[26].mxu0 %vm142_vm0, %v104_v53 }
 0x165   :  { %6181 = vmatmul.mubr.msk.f32.gmra.mrb[26].mxu1 %vm142_vm0, %v104_v53  ;;  %v6794_v53 = vpack.c.bf16 %v2656_v17, %v2655_v11 }
 0x203   :  { %v6077_v33 = vpop.f32.mrb[0].mxu0 }
 0x204   :  { %v6143_v34 = vpop.f32.mrb[0].mxu1  ;;  %v2135_v36 = vpop.f32.mrb[1].mxu0 }
 0x205   :  { %v2549_v37 = vmax.f32 %v6077_v33, %v6143_v34  ;;  %v2381_v38 = vpop.f32.mrb[1].mxu1  ;;  %v6798_v33 = vpack.c.bf16 %v2658_v0, %v2657_v61 }
 0x206   :  { %v2548_v39 = vmax.f32 %v2135_v36, %v2381_v38 }
 0x207   :  { %v2584_v40 = vadd.f32 %v8509_v35, %v2549_v37  ;;  %v6080_v41 = vpop.f32.mrb[2].mxu0 }
 0x208   :  { %v2583_v42 = vadd.f32 %v8509_v35, %v2548_v39  ;;  %v6146_v26 = vpop.f32.mrb[2].mxu1  ;;  %v2145_v49 = vpop.f32.mrb[3].mxu0  ;;  %v6822_v39 = vpack.c.bf16 %v2665_v21, %v2664_v16 }
 0x209   :  { %v2612_v50 = vmax.f32 %v2584_v40, 0.0  ;;  %v2551_v51 = vmax.f32 %v6080_v41, %v6146_v26  ;;  %v2391_v48 = vpop.f32.mrb[3].mxu1 }
 0x20a   :  { %v2611_v52 = vmax.f32 %v2583_v42, 0.0  ;;  %v2550_v45 = vmax.f32 %v2145_v49, %v2391_v48 }
 0x20b   :  { %v2586_v54 = vadd.f32 %v8509_v35, %v2551_v51  ;;  %v6083_v55 = vpop.f32.mrb[4].mxu0 }
 0x20c   :  { %v8514_v57 = vmax.f32 %v2611_v52, %v2612_v50  ;;  %v2585_v22 = vadd.f32 %v8509_v35, %v2550_v45  ;;  %v6149_v58 = vpop.f32.mrb[4].mxu1  ;;  %v2155_v59 = vpop.f32.mrb[5].mxu0  ;;  %v2659_v45 = vld [vmem:[#allocation2 + $0x30] sm:$0xff] }
 0x20d   :  { %v2614_v60 = vmax.f32 %v2586_v54, 0.0  ;;  %v2553_v62 = vmax.f32 %v6083_v55, %v6149_v58  ;;  %v2401_v63 = vpop.f32.mrb[5].mxu1  ;;  %v3178_v54 = vld [vmem:[#allocation2 + $0x70] sm:$0xff]  ;;  %v3179_v55 = vld [vmem:[#allocation2 + $0x78] sm:$0xff] }
 0x20e   :  { %v2613_v1 = vmax.f32 %v2585_v22, 0.0  ;;  %v2552_v2 = vmax.f32 %v2155_v59, %v2401_v63  ;;  %v3315_v63 = vld [vmem:[#allocation4 + $0x78] sm:$0xff] }
 0x20f   :  { %v2588_v3 = vadd.f32 %v8509_v35, %v2553_v62  ;;  %v6086_v4 = vpop.f32.mrb[6].mxu0  ;;  %v3314_v62 = vld [vmem:[#allocation4 + $0x70] sm:$0xff] }
 0x210   :  { %v8518_v6 = vmax.f32 %v2613_v1, %v2614_v60  ;;  %v2587_v7 = vadd.f32 %v8509_v35, %v2552_v2  ;;  %v6152_v9 = vpop.f32.mrb[6].mxu1  ;;  %v2165_v10 = vpop.f32.mrb[7].mxu0  ;;  %v2666_v60 = vld [vmem:[#allocation4 + $0x30] sm:$0xff] }
 0x211   :  { %v2616_v12 = vmax.f32 %v2588_v3, 0.0  ;;  %v2555_v14 = vmax.f32 %v6086_v4, %v6152_v9  ;;  %v2411_v15 = vpop.f32.mrb[7].mxu1 }
 0x212   :  { %v2615_v20 = vmax.f32 %v2587_v7, 0.0  ;;  %v2554_v23 = vmax.f32 %v2165_v10, %v2411_v15  ;;  %6197 = vmatprep.mubr.msk.f32.mxu0 %vm2675_vm1, %v8518_v6  ;;  %6255 = vmatprep.mubr.msk.f32.mxu1 %vm2675_vm1, %v8518_v6  ;;  %v8552_v7 = vpack.c.bf16 %v3179_v55, %v3178_v54 }
 0x213   :  { %v2590_v24 = vadd.f32 %v8509_v35, %v2555_v14  ;;  %v6089_v27 = vpop.f32.mrb[8].mxu0  ;;  %v8557_v14 = vpack.c.bf16 %v3315_v63, %v3314_v62 }
 0x214   :  { %v8526_v43 = vmax.f32 %v2615_v20, %v2616_v12  ;;  %v2589_v44 = vadd.f32 %v8509_v35, %v2554_v23  ;;  %v6155_v46 = vpop.f32.mrb[8].mxu1  ;;  %v2175_v47 = vpop.f32.mrb[9].mxu0 }
 0x215   :  { %v2618_v5 = vmax.f32 %v2590_v24, 0.0  ;;  %v2557_v8 = vmax.f32 %v6089_v27, %v6155_v46  ;;  %v2421_v13 = vpop.f32.mrb[9].mxu1 }
 0x216   :  { %v2617_v25 = vmax.f32 %v2589_v44, 0.0  ;;  %v2556_v28 = vmax.f32 %v2175_v47, %v2421_v13  ;;  %6198 = vmatmul.mubr.msk.f32.vlgmr.msra.gmra.mrb[28].mxu0 %vm2675_vm1, %v8526_v43  ;;  %6256 = vmatmul.mubr.msk.f32.vlgmr.msra.gmra.mrb[28].mxu1 %vm2675_vm1, %v8526_v43 }
 0x217   :  { %v2592_v29 = vadd.f32 %v8509_v35, %v2557_v8  ;;  %v6092_v31 = vpop.f32.mrb[10].mxu0  ;;  %6793 = vmatpush3.bf16.msra.mxu0 %v8500_v30  ;;  %6817 = vmatpush3.bf16.msra.mxu1 %v8502_v32 }
 0x218   :  { %v8536_v34 = vmax.f32 %v2617_v25, %v2618_v5  ;;  %v2591_v36 = vadd.f32 %v8509_v35, %v2556_v28  ;;  %v6158_v37 = vpop.f32.mrb[10].mxu1  ;;  %v2185_v38 = vpop.f32.mrb[11].mxu0  ;;  %6795 = vmatprep.subr.bf16.mxu0 %v6794_v53  ;;  %6819 = vmatprep.subr.bf16.mxu1 %v6818_v56 }
 0x219   :  { %v2620_v40 = vmax.f32 %v2592_v29, 0.0  ;;  %v2559_v41 = vmax.f32 %v6092_v31, %v6158_v37  ;;  %v2431_v42 = vpop.f32.mrb[11].mxu1 }
 0x21a   :  { %v2619_v26 = vmax.f32 %v2591_v36, 0.0  ;;  %v2558_v49 = vmax.f32 %v2185_v38, %v2431_v42  ;;  %6200 = vmatprep.mubr.msk.f32.mxu0 %vm2675_vm1, %v8536_v34  ;;  %6258 = vmatprep.mubr.msk.f32.mxu1 %vm2675_vm1, %v8536_v34 }
 0x21b   :  { %v2594_v30 = vadd.f32 %v8509_v35, %v2559_v41  ;;  %v6095_v32 = vpop.f32.mrb[12].mxu0  ;;  %6797 = vmatpush3.bf16.msra.mxu0 %v6794_v53  ;;  %6821 = vmatpush3.bf16.msra.mxu1 %v6818_v56 }
 0x21c   :  { %v8544_v50 = vmax.f32 %v2619_v26, %v2620_v40  ;;  %v2593_v51 = vadd.f32 %v8509_v35, %v2558_v49  ;;  %v6161_v48 = vpop.f32.mrb[12].mxu1  ;;  %v2195_v52 = vpop.f32.mrb[13].mxu0  ;;  %6799 = vmatprep.subr.bf16.mxu0 %v6798_v33  ;;  %6823 = vmatprep.subr.bf16.mxu1 %v6822_v39 }
 0x21d   :  { %v2622_v22 = vmax.f32 %v2594_v30, 0.0  ;;  %v2561_v58 = vmax.f32 %v6095_v32, %v6161_v48  ;;  %v2441_v59 = vpop.f32.mrb[13].mxu1 }
 0x21e   :  { %v2621_v1 = vmax.f32 %v2593_v51, 0.0  ;;  %v2560_v2 = vmax.f32 %v2195_v52, %v2441_v59  ;;  %6201 = vmatmul.mubr.msk.f32.gmra.mrb[30].mxu0 %vm2675_vm1, %v8544_v50  ;;  %6259 = vmatmul.mubr.msk.f32.gmra.mrb[30].mxu1 %vm2675_vm1, %v8544_v50 }
 0x21f   :  { %v2596_v3 = vadd.f32 %v8509_v35, %v2561_v58  ;;  %v6098_v4 = vpop.f32.mrb[14].mxu0  ;;  %6801 = vmatpush3.bf16.msra.mxu0 %v6798_v33  ;;  %6825 = vmatpush3.bf16.msra.mxu1 %v6822_v39 }
 0x220   :  { %v8554_v9 = vmax.f32 %v2621_v1, %v2622_v22  ;;  %v2595_v10 = vadd.f32 %v8509_v35, %v2560_v2  ;;  %v6164_v11 = vpop.f32.mrb[14].mxu1  ;;  %v2205_v12 = vpop.f32.mrb[15].mxu0  ;;  %6224 = vmatprep.subr.mxu0 %v2659_v45  ;;  %6282 = vmatprep.subr.mxu1 %v2666_v60 }
 0x221   :  { %v2624_v15 = vmax.f32 %v2596_v3, 0.0  ;;  %v2563_v17 = vmax.f32 %v6098_v4, %v6164_v11  ;;  %v2451_v18 = vpop.f32.mrb[15].mxu1 }
 0x222   :  { %v2623_v19 = vmax.f32 %v2595_v10, 0.0  ;;  %v2562_v20 = vmax.f32 %v2205_v12, %v2451_v18  ;;  %6203 = vmatprep.mubr.msk.f32.mxu0 %vm2675_vm1, %v8554_v9  ;;  %6261 = vmatprep.mubr.msk.f32.mxu1 %vm2675_vm1, %v8554_v9 }
 0x223   :  { %v2598_v23 = vadd.f32 %v8509_v35, %v2563_v17  ;;  %v6101_v24 = vpop.f32.mrb[16].mxu0  ;;  %6225 = vmatpush3.msra.mxu0 %v2659_v45  ;;  %6283 = vmatpush3.msra.mxu1 %v2666_v60 }
 0x224   :  { %v8564_v27 = vmax.f32 %v2623_v19, %v2624_v15  ;;  %v2597_v44 = vadd.f32 %v8509_v35, %v2562_v20  ;;  %v6167_v46 = vpop.f32.mrb[16].mxu1  ;;  %v2215_v47 = vpop.f32.mrb[17].mxu0  ;;  %6827 = vmatprep.subr.bf16.mxu0 %v8552_v7  ;;  %6839 = vmatprep.subr.bf16.mxu1 %v8557_v14  ;;  %v3180_v19 = vld [vmem:[#allocation2 + $0x80] sm:$0xff] }
 0x225   :  { %v2626_v53 = vmax.f32 %v2598_v23, 0.0  ;;  %v2565_v56 = vmax.f32 %v6101_v24, %v6167_v46  ;;  %v2461_v61 = vpop.f32.mrb[17].mxu1  ;;  %v3181_v24 = vld [vmem:[#allocation2 + $0x88] sm:$0xff]  ;;  %v3317_v46 = vld [vmem:[#allocation4 + $0x88] sm:$0xff] }
 0x226   :  { %v2625_v0 = vmax.f32 %v2597_v44, 0.0  ;;  %v2564_v5 = vmax.f32 %v2215_v47, %v2461_v61  ;;  %6204 = vmatmul.mubr.msk.f32.gmra.mrb[32].mxu0 %vm2675_vm1, %v8564_v27  ;;  %6262 = vmatmul.mubr.msk.f32.gmra.mrb[32].mxu1 %vm2675_vm1, %v8564_v27  ;;  %v3316_v44 = vld [vmem:[#allocation4 + $0x80] sm:$0xff] }
 0x227   :  { %v2600_v8 = vadd.f32 %v8509_v35, %v2565_v56  ;;  %v6104_v13 = vpop.f32.mrb[18].mxu0 }
 0x228   :  { %v8574_v16 = vmax.f32 %v2625_v0, %v2626_v53  ;;  %v2599_v21 = vadd.f32 %v8509_v35, %v2564_v5  ;;  %v6170_v25 = vpop.f32.mrb[18].mxu1  ;;  %v2225_v28 = vpop.f32.mrb[19].mxu0 }
 0x229   :  { %v2628_v29 = vmax.f32 %v2600_v8, 0.0  ;;  %v2567_v31 = vmax.f32 %v6104_v13, %v6170_v25  ;;  %v2471_v33 = vpop.f32.mrb[19].mxu1  ;;  %v6830_v25 = vpack.c.bf16 %v3181_v24, %v3180_v19  ;;  %v3853_v19 = vld [vmem:[#allocation4 + $0xe8] sm:$0xff]  ;;  %v3718_v24 = vld [vmem:[#allocation2 + $0xf0] sm:$0xff] }
 0x22a   :  { %v2627_v36 = vmax.f32 %v2599_v21, 0.0  ;;  %v2566_v37 = vmax.f32 %v2225_v28, %v2471_v33  ;;  %6206 = vmatprep.mubr.msk.f32.mxu0 %vm2675_vm1, %v8574_v16  ;;  %6264 = vmatprep.mubr.msk.f32.mxu1 %vm2675_vm1, %v8574_v16  ;;  %v6842_v28 = vpack.c.bf16 %v3317_v46, %v3316_v44  ;;  %v3719_v44 = vld [vmem:[#allocation2 + $0xf8] sm:$0xff]  ;;  %v3854_v46 = vld [vmem:[#allocation4 + $0xf0] sm:$0xff] }
 0x22b   :  { %v2602_v38 = vadd.f32 %v8509_v35, %v2567_v31  ;;  %v6107_v39 = vpop.f32.mrb[20].mxu0 }
 0x22c   :  { %v8582_v40 = vmax.f32 %v2627_v36, %v2628_v29  ;;  %v2601_v41 = vadd.f32 %v8509_v35, %v2566_v37  ;;  %v6173_v42 = vpop.f32.mrb[20].mxu1  ;;  %v2235_v26 = vpop.f32.mrb[21].mxu0  ;;  %v3182_v29 = vld [vmem:[#allocation2 + $0x90] sm:$0xff]  ;;  %v3318_v36 = vld [vmem:[#allocation4 + $0x90] sm:$0xff] }
 0x22d   :  { %v2630_v49 = vmax.f32 %v2602_v38, 0.0  ;;  %v2569_v30 = vmax.f32 %v6107_v39, %v6173_v42  ;;  %v2481_v32 = vpop.f32.mrb[21].mxu1  ;;  %v3319_v37 = vld [vmem:[#allocation4 + $0x98] sm:$0xff] }
 0x22e   :  { %v2629_v51 = vmax.f32 %v2601_v41, 0.0  ;;  %v2568_v48 = vmax.f32 %v2235_v26, %v2481_v32  ;;  %6207 = vmatmul.mubr.msk.f32.gmra.mrb[34].mxu0 %vm2675_vm1, %v8582_v40  ;;  %6265 = vmatmul.mubr.msk.f32.gmra.mrb[34].mxu1 %vm2675_vm1, %v8582_v40  ;;  %v6846_v26 = vpack.c.bf16 %v3319_v37, %v3318_v36  ;;  %v3448_v32 = vld [vmem:[#allocation2 + $0xb0] sm:$0xff]  ;;  %v7316_v37 = vmov 0.0  }
 0x22f   :  { %v2604_v52 = vadd.f32 %v8509_v35, %v2569_v30  ;;  %v6110_v45 = vpop.f32.mrb[22].mxu0  ;;  %v3447_v30 = vld [vmem:[#allocation2 + $0xa8] sm:$0xff] }
 0x230   :  { %v8590_v54 = vmax.f32 %v2629_v51, %v2630_v49  ;;  %v2603_v55 = vadd.f32 %v8509_v35, %v2568_v48  ;;  %v6176_v22 = vpop.f32.mrb[22].mxu1  ;;  %v2245_v58 = vpop.f32.mrb[23].mxu0  ;;  %v3583_v51 = vld [vmem:[#allocation4 + $0xa8] sm:$0xff]  ;;  %v3584_v48 = vld [vmem:[#allocation4 + $0xb0] sm:$0xff] }
 0x231   :  { %v2632_v59 = vmax.f32 %v2604_v52, 0.0  ;;  %v2571_v60 = vmax.f32 %v6110_v45, %v6176_v22  ;;  %v2491_v62 = vpop.f32.mrb[23].mxu1  ;;  %v6850_v52 = vpack.c.bf16 %v3448_v32, %v3447_v30  ;;  %v6862_v45 = vpack.c.bf16 %v3584_v48, %v3583_v51  ;;  %v3450_v22 = vld [vmem:[#allocation2 + $0xc0] sm:$0xff]  ;;  %v4265_v48 = vld [vmem:[#allocation6 + $0x78] sm:$0xff] }
 0x232   :  { %v2631_v63 = vmax.f32 %v2603_v55, 0.0  ;;  %v2570_v1 = vmax.f32 %v2245_v58, %v2491_v62  ;;  %6209 = vmatprep.mubr.msk.f32.mxu0 %vm2675_vm1, %v8590_v54  ;;  %6267 = vmatprep.mubr.msk.f32.mxu1 %vm2675_vm1, %v8590_v54  ;;  %v3449_v55 = vld [vmem:[#allocation2 + $0xb8] sm:$0xff]  ;;  %v3585_v58 = vld [vmem:[#allocation4 + $0xb8] sm:$0xff] }
 0x233   :  { %v2606_v2 = vadd.f32 %v8509_v35, %v2571_v60  ;;  %v6113_v3 = vpop.f32.mrb[24].mxu0  ;;  %v6854_v60 = vpack.c.bf16 %v3450_v22, %v3449_v55 }
 0x234   :  { %v8598_v4 = vmax.f32 %v2631_v63, %v2632_v59  ;;  %v2605_v10 = vadd.f32 %v8509_v35, %v2570_v1  ;;  %v6179_v11 = vpop.f32.mrb[24].mxu1  ;;  %v2255_v12 = vpop.f32.mrb[25].mxu0  ;;  %v3586_v59 = vld [vmem:[#allocation4 + $0xc0] sm:$0xff]  ;;  %v3451_v63 = vld [vmem:[#allocation2 + $0xc8] sm:$0xff]  ;;  %v3452_v1 = vld [vmem:[#allocation2 + $0xd0] sm:$0xff] }
 0x235   :  { %v2634_v15 = vmax.f32 %v2606_v2, 0.0  ;;  %v2573_v17 = vmax.f32 %v6113_v3, %v6179_v11  ;;  %v2501_v18 = vpop.f32.mrb[25].mxu1  ;;  %v6866_v62 = vpack.c.bf16 %v3586_v59, %v3585_v58  ;;  %v3587_v2 = vld [vmem:[#allocation4 + $0xc8] sm:$0xff]  ;;  %v3588_v3 = vld [vmem:[#allocation4 + $0xd0] sm:$0xff]  ;;  %v3453_v11 = vld [vmem:[#allocation2 + $0xd8] sm:$0xff] }
 0x236   :  { %v2633_v20 = vmax.f32 %v2605_v10, 0.0  ;;  %v2572_v23 = vmax.f32 %v2255_v12, %v2501_v18  ;;  %6210 = vmatmul.mubr.msk.f32.gmra.mrb[36].mxu0 %vm2675_vm1, %v8598_v4  ;;  %6268 = vmatmul.mubr.msk.f32.gmra.mrb[36].mxu1 %vm2675_vm1, %v8598_v4  ;;  %v6870_v10 = vpack.c.bf16 %v3588_v3, %v3587_v2  ;;  %v3589_v12 = vld [vmem:[#allocation4 + $0xd8] sm:$0xff]  ;;  %v3852_v18 = vld [vmem:[#allocation4 + $0xe0] sm:$0xff] }
 0x237   :  { %v2608_v47 = vadd.f32 %v8509_v35, %v2573_v17  ;;  %6226 = vmatprep.mubr.msk.f32.mxu0 %vm2675_vm1, %v8514_v57  ;;  %6284 = vmatprep.mubr.msk.f32.mxu1 %vm2675_vm1, %v8514_v57  ;;  %v6116_v53 = vpop.f32.mrb[26].mxu0  ;;  %v3183_v57 = vld [vmem:[#allocation2 + $0x98] sm:$0xff]  ;;  %v3717_v17 = vld [vmem:[#allocation2 + $0xe8] sm:$0xff] }
 0x238   :  { %v8610_v56 = vmax.f32 %v2633_v20, %v2634_v15  ;;  %v2607_v61 = vadd.f32 %v8509_v35, %v2572_v23  ;;  %v6182_v0 = vpop.f32.mrb[26].mxu1  ;;  %v2265_v5 = vpop.f32.mrb[27].mxu0  ;;  %v6834_v42 = vpack.c.bf16 %v3183_v57, %v3182_v29  ;;  %v3716_v15 = vld [vmem:[#allocation2 + $0xe0] sm:$0xff]  ;;  %v6886_v23 = vpack.c.bf16 %v3853_v19, %v3852_v18 }
 0x239   :  { %v2636_v8 = vmax.f32 %v2608_v47, 0.0  ;;  %v2575_v13 = vmax.f32 %v6116_v53, %v6182_v0  ;;  %v2511_v21 = vpop.f32.mrb[27].mxu1  ;;  %v6874_v20 = vpack.c.bf16 %v3717_v17, %v3716_v15  ;;  %v3855_v47 = vld [vmem:[#allocation4 + $0xf8] sm:$0xff]  ;;  %v6878_v53 = vpack.c.bf16 %v3719_v44, %v3718_v24  ;;  %v3720_v0 = vld [vmem:[#allocation2 + $0x100] sm:$0xff] }
 0x23a   :  { %v2635_v31 = vmax.f32 %v2607_v61, 0.0  ;;  %v2574_v33 = vmax.f32 %v2265_v5, %v2511_v21  ;;  %6227 = vmatmul.mubr.msk.f32.vlgmr.msra.gmra.mrb[28].mxu0 %vm2675_vm1, %v8518_v6  ;;  %6285 = vmatmul.mubr.msk.f32.vlgmr.msra.gmra.mrb[28].mxu1 %vm2675_vm1, %v8518_v6  ;;  %v6890_v61 = vpack.c.bf16 %v3855_v47, %v3854_v46  ;;  %v3721_v5 = vld [vmem:[#allocation2 + $0x108] sm:$0xff]  ;;  %v7315_v29 = vmov 0.0|0.0   ;;  %v4268_v15 = vld [vmem:[#allocation6 + $0x90] sm:$0xff] }
 0x23b   :  { %v2610_v38 = vadd.f32 %v8509_v35, %v2575_v13  ;;  %6229 = vmatprep.mubr.msk.f32.mxu0 %vm2675_vm1, %v8526_v43  ;;  %6287 = vmatprep.mubr.msk.f32.mxu1 %vm2675_vm1, %v8526_v43  ;;  %v3857_v13 = vld [vmem:[#allocation4 + $0x108] sm:$0xff] }
 0x23c   :  { %v8622_v39 = vmax.f32 %v2635_v31, %v2636_v8  ;;  %v2609_v41 = vadd.f32 %v8509_v35, %v2574_v33  ;;  %6829 = vmatpush3.bf16.msra.mxu0 %v8552_v7  ;;  %6841 = vmatpush3.bf16.msra.mxu1 %v8557_v14  ;;  %v3184_v7 = vld [vmem:[#allocation2 + $0xa0] sm:$0xff]  ;;  %v3320_v14 = vld [vmem:[#allocation4 + $0xa0] sm:$0xff] }
 0x23d   :  { %v2638_v6 = vmax.f32 %v2610_v38, 0.0  ;;  %6831 = vmatprep.subr.bf16.mxu0 %v6830_v25  ;;  %6843 = vmatprep.subr.bf16.mxu1 %v6842_v28  ;;  %v3856_v8 = vld [vmem:[#allocation4 + $0x100] sm:$0xff]  ;;  %v4033_v33 = vld [vmem:[#allocation6 + $0x30] sm:$0xff]  ;;  %v4030_v38 = vld [vmem:[#allocation6 + $0x20] sm:$0xff] }
 0x23e   :  { %v2637_v49 = vmax.f32 %v2609_v41, 0.0  ;;  %6230 = vmatmul.mubr.msk.f32.gmra.mrb[30].mxu0 %vm2675_vm1, %v8536_v34  ;;  %6288 = vmatmul.mubr.msk.f32.gmra.mrb[30].mxu1 %vm2675_vm1, %v8536_v34  ;;  %v6894_v21 = vpack.c.bf16 %v3857_v13, %v3856_v8  ;;  %v4032_v31 = vld [vmem:[#allocation6 + $0x28] sm:$0xff]  ;;  %v4187_v8 = vld [vmem:[#allocation6 + $0x60] sm:$0xff] }
 0x23f   :  { %6232 = vmatprep.mubr.msk.f32.mxu0 %vm2675_vm1, %v8544_v50  ;;  %6290 = vmatprep.mubr.msk.f32.mxu1 %vm2675_vm1, %v8544_v50  ;;  %v6899_v57 = vpack.c.bf16 %v4033_v33, %v4032_v31  ;;  %v4188_v13 = vld [vmem:[#allocation6 + $0x68] sm:$0xff] }
 0x240   :  { %v8635_v35 = vmax.f32 %v2637_v49, %v2638_v6  ;;  %6833 = vmatpush3.bf16.msra.mxu0 %v6830_v25  ;;  %6845 = vmatpush3.bf16.msra.mxu1 %v6842_v28  ;;  %v3722_v25 = vld [vmem:[#allocation2 + $0x110] sm:$0xff]  ;;  %v3858_v28 = vld [vmem:[#allocation4 + $0x110] sm:$0xff] }
 0x241   :  { %6835 = vmatprep.subr.bf16.mxu0 %v6834_v42  ;;  %6847 = vmatprep.subr.bf16.mxu1 %v6846_v26 }
 0x242   :  { %6233 = vmatmul.mubr.msk.f32.gmra.mrb[32].mxu0 %vm2675_vm1, %v8554_v9  ;;  %6291 = vmatmul.mubr.msk.f32.gmra.mrb[32].mxu1 %vm2675_vm1, %v8554_v9 }
 0x243   :  { %6235 = vmatprep.mubr.msk.f32.mxu0 %vm2675_vm1, %v8564_v27  ;;  %6293 = vmatprep.mubr.msk.f32.mxu1 %vm2675_vm1, %v8564_v27 }
 0x244   :  { %6837 = vmatpush3.bf16.msra.mxu0 %v6834_v42  ;;  %6849 = vmatpush3.bf16.msra.mxu1 %v6846_v26  ;;  %v8792_v42 = vld [vmem:[%s8835_s6] ss:$0 sm:$0xff] }
 0x245   :  { %6311 = vmatprep.subr.mxu0 %v3184_v7  ;;  %6340 = vmatprep.subr.mxu1 %v3320_v14 }
 0x246   :  { %6236 = vmatmul.mubr.msk.f32.gmra.mrb[34].mxu0 %vm2675_vm1, %v8574_v16  ;;  %6294 = vmatmul.mubr.msk.f32.gmra.mrb[34].mxu1 %vm2675_vm1, %v8574_v16 }
 0x247   :  { %6238 = vmatprep.mubr.msk.f32.mxu0 %vm2675_vm1, %v8582_v40  ;;  %6296 = vmatprep.mubr.msk.f32.mxu1 %vm2675_vm1, %v8582_v40 }
 0x248   :  { %6312 = vmatpush3.msra.mxu0 %v3184_v7  ;;  %6341 = vmatpush3.msra.mxu1 %v3320_v14 }
 0x249   :  { %6851 = vmatprep.subr.bf16.mxu0 %v6850_v52  ;;  %6863 = vmatprep.subr.bf16.mxu1 %v6862_v45 }
 0x24a   :  { %6239 = vmatmul.mubr.msk.f32.gmra.mrb[36].mxu0 %vm2675_vm1, %v8590_v54  ;;  %6297 = vmatmul.mubr.msk.f32.gmra.mrb[36].mxu1 %vm2675_vm1, %v8590_v54 }
 0x24b   :  { %6313 = vmatprep.mubr.msk.f32.mxu0 %vm2675_vm1, %v8526_v43  ;;  %6342 = vmatprep.mubr.msk.f32.mxu1 %vm2675_vm1, %v8526_v43  ;;  %v6858_v43 = vpack.c.bf16 %v3452_v1, %v3451_v63  ;;  %v4185_v1 = vld [vmem:[#allocation6 + $0x50] sm:$0xff] }
 0x24e   :  { %6314 = vmatmul.mubr.msk.f32.vlgmr.msra.gmra.mrb[28].mxu0 %vm2675_vm1, %v8536_v34  ;;  %6343 = vmatmul.mubr.msk.f32.vlgmr.msra.gmra.mrb[28].mxu1 %vm2675_vm1, %v8536_v34 }
 0x24f   :  { %6316 = vmatprep.mubr.msk.f32.mxu0 %vm2675_vm1, %v8544_v50  ;;  %6345 = vmatprep.mubr.msk.f32.mxu1 %vm2675_vm1, %v8544_v50 }
 0x250   :  { %6853 = vmatpush3.bf16.msra.mxu0 %v6850_v52  ;;  %6865 = vmatpush3.bf16.msra.mxu1 %v6862_v45  ;;  %v4266_v52 = vld [vmem:[#allocation6 + $0x80] sm:$0xff] }
 0x251   :  { %6855 = vmatprep.subr.bf16.mxu0 %v6854_v60  ;;  %6867 = vmatprep.subr.bf16.mxu1 %v6866_v62  ;;  %v6917_v63 = vpack.c.bf16 %v4266_v52, %v4265_v48  ;;  %v4347_v48 = vld [vmem:[#allocation6 + $0xb0] sm:$0xff]  ;;  %v4348_v52 = vld [vmem:[#allocation6 + $0xb8] sm:$0xff] }
 0x252   :  { %6317 = vmatmul.mubr.msk.f32.gmra.mrb[30].mxu0 %vm2675_vm1, %v8554_v9  ;;  %6346 = vmatmul.mubr.msk.f32.gmra.mrb[30].mxu1 %vm2675_vm1, %v8554_v9 }
 0x253   :  { %6319 = vmatprep.mubr.msk.f32.mxu0 %vm2675_vm1, %v8564_v27  ;;  %6348 = vmatprep.mubr.msk.f32.mxu1 %vm2675_vm1, %v8564_v27 }
 0x254   :  { %6857 = vmatpush3.bf16.msra.mxu0 %v6854_v60  ;;  %6869 = vmatpush3.bf16.msra.mxu1 %v6866_v62 }
 0x255   :  { %6859 = vmatprep.subr.bf16.mxu0 %v6858_v43  ;;  %6871 = vmatprep.subr.bf16.mxu1 %v6870_v10 }
 0x256   :  { %6320 = vmatmul.mubr.msk.f32.gmra.mrb[32].mxu0 %vm2675_vm1, %v8574_v16  ;;  %6349 = vmatmul.mubr.msk.f32.gmra.mrb[32].mxu1 %vm2675_vm1, %v8574_v16 }
 0x257   :  { %6322 = vmatprep.mubr.msk.f32.mxu0 %vm2675_vm1, %v8582_v40  ;;  %6351 = vmatprep.mubr.msk.f32.mxu1 %vm2675_vm1, %v8582_v40 }
 0x258   :  { %6861 = vmatpush3.bf16.msra.mxu0 %v6858_v43  ;;  %6873 = vmatpush3.bf16.msra.mxu1 %v6870_v10 }
 0x259   :  { %6369 = vmatprep.subr.mxu0 %v3453_v11  ;;  %6398 = vmatprep.subr.mxu1 %v3589_v12 }
 0x25a   :  { %6323 = vmatmul.mubr.msk.f32.gmra.mrb[34].mxu0 %vm2675_vm1, %v8590_v54  ;;  %6352 = vmatmul.mubr.msk.f32.gmra.mrb[34].mxu1 %vm2675_vm1, %v8590_v54 }
 0x25b   :  { %6325 = vmatprep.mubr.msk.f32.mxu0 %vm2675_vm1, %v8598_v4  ;;  %6354 = vmatprep.mubr.msk.f32.mxu1 %vm2675_vm1, %v8598_v4 }
 0x25c   :  { %6370 = vmatpush3.msra.mxu0 %v3453_v11  ;;  %6399 = vmatpush3.msra.mxu1 %v3589_v12  ;;  %v4186_v11 = vld [vmem:[#allocation6 + $0x58] sm:$0xff]  ;;  %v4267_v12 = vld [vmem:[#allocation6 + $0x88] sm:$0xff] }
 0x25d   :  { %6875 = vmatprep.subr.bf16.mxu0 %v6874_v20  ;;  %6887 = vmatprep.subr.bf16.mxu1 %v6886_v23  ;;  %v6911_v46 = vpack.c.bf16 %v4186_v11, %v4185_v1  ;;  %v6920_v47 = vpack.c.bf16 %v4268_v15, %v4267_v12 }
 0x25e   :  { %6326 = vmatmul.mubr.msk.f32.gmra.mrb[36].mxu0 %vm2675_vm1, %v8610_v56  ;;  %6355 = vmatmul.mubr.msk.f32.gmra.mrb[36].mxu1 %vm2675_vm1, %v8610_v56 }
 0x25f   :  { %6371 = vmatprep.mubr.msk.f32.mxu0 %vm2675_vm1, %v8536_v34  ;;  %6400 = vmatprep.mubr.msk.f32.mxu1 %vm2675_vm1, %v8536_v34  ;;  %v6882_v34 = vpack.c.bf16 %v3721_v5, %v3720_v0 }
 0x262   :  { %6372 = vmatmul.mubr.msk.f32.vlgmr.msra.gmra.mrb[28].mxu0 %vm2675_vm1, %v8544_v50  ;;  %6401 = vmatmul.mubr.msk.f32.vlgmr.msra.gmra.mrb[28].mxu1 %vm2675_vm1, %v8544_v50 }
 0x263   :  { %6374 = vmatprep.mubr.msk.f32.mxu0 %vm2675_vm1, %v8554_v9  ;;  %6403 = vmatprep.mubr.msk.f32.mxu1 %vm2675_vm1, %v8554_v9 }
 0x264   :  { %6877 = vmatpush3.bf16.msra.mxu0 %v6874_v20  ;;  %6889 = vmatpush3.bf16.msra.mxu1 %v6886_v23 }
 0x265   :  { %6879 = vmatprep.subr.bf16.mxu0 %v6878_v53  ;;  %6891 = vmatprep.subr.bf16.mxu1 %v6890_v61 }
 0x266   :  { %6375 = vmatmul.mubr.msk.f32.gmra.mrb[30].mxu0 %vm2675_vm1, %v8564_v27  ;;  %6404 = vmatmul.mubr.msk.f32.gmra.mrb[30].mxu1 %vm2675_vm1, %v8564_v27 }
 0x267   :  { %6377 = vmatprep.mubr.msk.f32.mxu0 %vm2675_vm1, %v8574_v16  ;;  %6406 = vmatprep.mubr.msk.f32.mxu1 %vm2675_vm1, %v8574_v16 }
 0x268   :  { %6881 = vmatpush3.bf16.msra.mxu0 %v6878_v53  ;;  %6893 = vmatpush3.bf16.msra.mxu1 %v6890_v61 }
 0x269   :  { %6883 = vmatprep.subr.bf16.mxu0 %v6882_v34  ;;  %6895 = vmatprep.subr.bf16.mxu1 %v6894_v21 }
 0x26a   :  { %6378 = vmatmul.mubr.msk.f32.gmra.mrb[32].mxu0 %vm2675_vm1, %v8582_v40  ;;  %6407 = vmatmul.mubr.msk.f32.gmra.mrb[32].mxu1 %vm2675_vm1, %v8582_v40 }
 0x26b   :  { %6380 = vmatprep.mubr.msk.f32.mxu0 %vm2675_vm1, %v8590_v54  ;;  %6409 = vmatprep.mubr.msk.f32.mxu1 %vm2675_vm1, %v8590_v54 }
 0x26c   :  { %6885 = vmatpush3.bf16.msra.mxu0 %v6882_v34  ;;  %6897 = vmatpush3.bf16.msra.mxu1 %v6894_v21 }
 0x26d   :  { %6427 = vmatprep.subr.mxu0 %v3722_v25  ;;  %6456 = vmatprep.subr.mxu1 %v3858_v28 }
 0x26e   :  { %6381 = vmatmul.mubr.msk.f32.gmra.mrb[34].mxu0 %vm2675_vm1, %v8598_v4  ;;  %6410 = vmatmul.mubr.msk.f32.gmra.mrb[34].mxu1 %vm2675_vm1, %v8598_v4 }
 0x26f   :  { %6383 = vmatprep.mubr.msk.f32.mxu0 %vm2675_vm1, %v8610_v56  ;;  %6412 = vmatprep.mubr.msk.f32.mxu1 %vm2675_vm1, %v8610_v56 }
 0x270   :  { %6428 = vmatpush3.msra.mxu0 %v3722_v25  ;;  %6457 = vmatpush3.msra.mxu1 %v3858_v28 }
 0x271   :  { %6898 = vmatprep.subr.bf16.mxu0 %v7315_v29  ;;  %6904 = vmatprep.subr.bf16.mxu1 %v7315_v29 }
 0x272   :  { %6384 = vmatmul.mubr.msk.f32.gmra.mrb[36].mxu0 %vm2675_vm1, %v8622_v39  ;;  %6413 = vmatmul.mubr.msk.f32.gmra.mrb[36].mxu1 %vm2675_vm1, %v8622_v39 }
 0x273   :  { %6429 = vmatprep.mubr.msk.f32.mxu0 %vm2675_vm1, %v8544_v50  ;;  %6458 = vmatprep.mubr.msk.f32.mxu1 %vm2675_vm1, %v8544_v50  ;;  %v4026_v50 = vld [vmem:[#allocation6] sm:$0xff] }
 0x276   :  { %6430 = vmatmul.mubr.msk.f32.vlgmr.msra.gmra.mrb[28].mxu0 %vm2675_vm1, %v8554_v9  ;;  %6459 = vmatmul.mubr.msk.f32.vlgmr.msra.gmra.mrb[28].mxu1 %vm2675_vm1, %v8554_v9  ;;  %v4027_v9 = vld [vmem:[#allocation6 + $0x8] sm:$0xff] }
 0x277   :  { %6432 = vmatprep.mubr.msk.f32.mxu0 %vm2675_vm1, %v8564_v27  ;;  %6461 = vmatprep.mubr.msk.f32.mxu1 %vm2675_vm1, %v8564_v27  ;;  %v6905_v27 = vpack.c.bf16 %v4027_v9, %v4026_v50  ;;  %v6914_v50 = vpack.c.bf16 %v4188_v13, %v4187_v8 }
 0x278   :  { %6900 = vmatpush3.bf16.msra.mxu0 %v6899_v57 }
 0x279   :  { %6901 = vmatprep.subr.bf16.mxu0 %v7315_v29  ;;  %6906 = vmatpush3.bf16.msra.mxu1 %v6905_v27 }
 0x27a   :  { %6433 = vmatmul.mubr.msk.f32.gmra.mrb[30].mxu0 %vm2675_vm1, %v8574_v16  ;;  %6462 = vmatmul.mubr.msk.f32.gmra.mrb[30].mxu1 %vm2675_vm1, %v8574_v16  ;;  %v4028_v16 = vld [vmem:[#allocation6 + $0x10] sm:$0xff] }
 0x27b   :  { %6435 = vmatprep.mubr.msk.f32.mxu0 %vm2675_vm1, %v8582_v40  ;;  %6464 = vmatprep.mubr.msk.f32.mxu1 %vm2675_vm1, %v8582_v40  ;;  %v4029_v40 = vld [vmem:[#allocation6 + $0x18] sm:$0xff] }
 0x27c   :  { %6907 = vmatprep.subr.bf16.mxu1 %v7315_v29 }
 0x27e   :  { %6436 = vmatmul.mubr.msk.f32.gmra.mrb[32].mxu0 %vm2675_vm1, %v8590_v54  ;;  %6465 = vmatmul.mubr.msk.f32.gmra.mrb[32].mxu1 %vm2675_vm1, %v8590_v54  ;;  %v6908_v54 = vpack.c.bf16 %v4029_v40, %v4028_v16 }
 0x27f   :  { %6438 = vmatprep.mubr.msk.f32.mxu0 %vm2675_vm1, %v8598_v4  ;;  %6467 = vmatprep.mubr.msk.f32.mxu1 %vm2675_vm1, %v8598_v4  ;;  %v4034_v4 = vld [vmem:[#allocation6 + $0x38] sm:$0xff] }
 0x280   :  { %6909 = vmatpush3.bf16.msra.mxu1 %v6908_v54  ;;  %v4269_v54 = vld [vmem:[#allocation6 + $0x98] sm:$0xff] }
 0x281   :  { %6494 = vmatprep.subr.mxu1 %v7316_v37 }
 0x282   :  { %6439 = vmatmul.mubr.msk.f32.gmra.mrb[34].mxu0 %vm2675_vm1, %v8610_v56  ;;  %6468 = vmatmul.mubr.msk.f32.gmra.mrb[34].mxu1 %vm2675_vm1, %v8610_v56  ;;  %v4035_v56 = vld [vmem:[#allocation6 + $0x40] sm:$0xff] }
 0x283   :  { %6441 = vmatprep.mubr.msk.f32.mxu0 %vm2675_vm1, %v8622_v39  ;;  %6470 = vmatprep.mubr.msk.f32.mxu1 %vm2675_vm1, %v8622_v39  ;;  %v6902_v36 = vpack.c.bf16 %v4035_v56, %v4034_v4  ;;  %v4036_v39 = vld [vmem:[#allocation6 + $0x48] sm:$0xff] }
 0x284   :  { %6495 = vmatpush3.msra.mxu1 %v4030_v38 }
 0x285   :  { %6903 = vmatpush3.bf16.msra.mxu0 %v6902_v36  ;;  %6916 = vmatprep.subr.bf16.mxu1 %v7315_v29 }
 0x286   :  { %6442 = vmatmul.mubr.msk.f32.gmra.mrb[36].mxu0 %vm2675_vm1, %v8635_v35  ;;  %6471 = vmatmul.mubr.msk.f32.gmra.mrb[36].mxu1 %vm2675_vm1, %v8635_v35 }
 0x287   :  { %6481 = vmatprep.subr.mxu0 %v7316_v37  ;;  %6496 = vmatprep.mubr.msk.f32.mxu1 %vm7317_vm2, %v7316_v37 }
 0x288   :  { %6483 = vmatprep.mubr.msk.f32.mxu0 %vm7317_vm2, %v7316_v37 }
 0x289   :  { %6482 = vmatpush3.msra.mxu0 %v4036_v39 }
 0x28a   :  { %6910 = vmatprep.subr.bf16.mxu0 %v7315_v29 }
 0x349   :  { %v6431_v41 = vpop.f32.mrb[28].mxu0  ;;  %v6460_v6 = vpop.f32.mrb[28].mxu1 }
 0x34a   :  { %v3985_v26 = vmax.f32 %v6431_v41, %v6460_v6  ;;  %v3792_v49 = vpop.f32.mrb[29].mxu0  ;;  %v3925_v35 = vpop.f32.mrb[29].mxu1  ;;  %v4345_v6 = vld [vmem:[#allocation6 + $0xa0] sm:$0xff] }
 0x34b   :  { %v3984_v7 = vmax.f32 %v3792_v49, %v3925_v35 }
 0x34c   :  { %v4002_v14 = vadd.f32 %v8792_v42, %v3985_v26  ;;  %v4346_v26 = vld [vmem:[#allocation6 + $0xa8] sm:$0xff] }
 0x34d   :  { %v4001_v30 = vadd.f32 %v8792_v42, %v3984_v7  ;;  %v6434_v32 = vpop.f32.mrb[30].mxu0  ;;  %v6463_v51 = vpop.f32.mrb[30].mxu1 }
 0x34e   :  { %v4012_v45 = vmax.f32 %v4002_v14, 0.0  ;;  %v3987_v55 = vmax.f32 %v6434_v32, %v6463_v51  ;;  %v3802_v22 = vpop.f32.mrb[31].mxu0  ;;  %v3935_v58 = vpop.f32.mrb[31].mxu1  ;;  %v4189_v14 = vld [vmem:[#allocation6 + $0x70] sm:$0xff]  ;;  %v6923_v32 = vpack.c.bf16 %v4346_v26, %v4345_v6 }
 0x34f   :  { %v4011_v59 = vmax.f32 %v4001_v30, 0.0  ;;  %v3986_v60 = vmax.f32 %v3802_v22, %v3935_v58 }
 0x350   :  { %v4004_v62 = vadd.f32 %v8792_v42, %v3987_v55  ;;  %v6926_v55 = vpack.c.bf16 %v4348_v52, %v4347_v48 }
 0x351   :  { %v4021_v2 = vmax.f32 %v4011_v59, %v4012_v45  ;;  %v4003_v3 = vadd.f32 %v8792_v42, %v3986_v60  ;;  %v6437_v43 = vpop.f32.mrb[32].mxu0  ;;  %v6466_v10 = vpop.f32.mrb[32].mxu1 }
 0x352   :  { %v4014_v17 = vmax.f32 %v4004_v62, 0.0  ;;  %v3989_v18 = vmax.f32 %v6437_v43, %v6466_v10  ;;  %v3812_v19 = vpop.f32.mrb[33].mxu0  ;;  %v3945_v20 = vpop.f32.mrb[33].mxu1 }
 0x353   :  { %v4013_v23 = vmax.f32 %v4003_v3, 0.0  ;;  %v3988_v24 = vmax.f32 %v3812_v19, %v3945_v20  ;;  %6497 = vmatmul.mubr.msk.f32.vlgmr.msra.gmra.mrb[38].mxu1 %vm4037_vm3, %v4021_v2 }
 0x354   :  { %v4006_v44 = vadd.f32 %v8792_v42, %v3989_v18  ;;  %6918 = vmatpush3.bf16.msra.mxu1 %v6917_v63  ;;  %6522 = vmatprep.mubr.msk.f32.mxu1 %vm7317_vm2, %v7316_v37 }
 0x355   :  { %v4022_v53 = vmax.f32 %v4013_v23, %v4014_v17  ;;  %v4005_v61 = vadd.f32 %v8792_v42, %v3988_v24  ;;  %v6440_v0 = vpop.f32.mrb[34].mxu0  ;;  %v6469_v5 = vpop.f32.mrb[34].mxu1  ;;  %6919 = vmatprep.subr.bf16.mxu1 %v7315_v29 }
 0x356   :  { %v4016_v34 = vmax.f32 %v4006_v44, 0.0  ;;  %v3991_v21 = vmax.f32 %v6440_v0, %v6469_v5  ;;  %v3822_v25 = vpop.f32.mrb[35].mxu0  ;;  %v3955_v28 = vpop.f32.mrb[35].mxu1 }
 0x357   :  { %v4015_v31 = vmax.f32 %v4005_v61, 0.0  ;;  %v3990_v33 = vmax.f32 %v3822_v25, %v3955_v28  ;;  %6484 = vmatmul.mubr.msk.f32.vlgmr.msra.gmra.mrb[38].mxu0 %vm4037_vm3, %v4022_v53 }
 0x358   :  { %v4008_v57 = vadd.f32 %v8792_v42, %v3991_v21  ;;  %6912 = vmatpush3.bf16.msra.mxu0 %v6911_v46  ;;  %6921 = vmatpush3.bf16.msra.mxu1 %v6920_v47 }
 0x359   :  { %v4023_v9 = vmax.f32 %v4015_v31, %v4016_v34  ;;  %v4007_v27 = vadd.f32 %v8792_v42, %v3990_v33  ;;  %v6443_v16 = vpop.f32.mrb[36].mxu0  ;;  %v6472_v40 = vpop.f32.mrb[36].mxu1  ;;  %6913 = vmatprep.subr.bf16.mxu0 %v7315_v29  ;;  %6520 = vmatprep.subr.mxu1 %v7316_v37 }
 0x35a   :  { %v4018_v4 = vmax.f32 %v4008_v57, 0.0  ;;  %v3993_v56 = vmax.f32 %v6443_v16, %v6472_v40  ;;  %v3832_v36 = vpop.f32.mrb[37].mxu0  ;;  %v3965_v38 = vpop.f32.mrb[37].mxu1  ;;  %6509 = vmatprep.mubr.msk.f32.mxu0 %vm7317_vm2, %v7316_v37 }
 0x35b   :  { %v4017_v39 = vmax.f32 %v4007_v27, 0.0  ;;  %v3992_v41 = vmax.f32 %v3832_v36, %v3965_v38 }
 0x35c   :  { %v4010_v49 = vadd.f32 %v8792_v42, %v3993_v56  ;;  %6915 = vmatpush3.bf16.msra.mxu0 %v6914_v50  ;;  %6521 = vmatpush3.msra.mxu1 %v4269_v54 }
 0x35d   :  { %v4024_v35 = vmax.f32 %v4017_v39, %v4018_v4  ;;  %v4009_v7 = vadd.f32 %v8792_v42, %v3992_v41  ;;  %6507 = vmatprep.subr.mxu0 %v7316_v37  ;;  %v4349_v42 = vld [vmem:[#allocation6 + $0xc0] sm:$0xff] }
 0x35e   :  { %v4020_v30 = vmax.f32 %v4010_v49, 0.0 }
 0x35f   :  { %v4019_v51 = vmax.f32 %v4009_v7, 0.0  ;;  %6523 = vmatmul.mubr.msk.f32.vlgmr.msra.gmra.mrb[40].mxu1 %vm4037_vm3, %v4024_v35 }
 0x360   :  { %6508 = vmatpush3.msra.mxu0 %v4189_v14 }
 0x361   :  { %v4025_v45 = vmax.f32 %v4019_v51, %v4020_v30  ;;  %6510 = vmatmul.mubr.msk.f32.vlgmr.msra.gmra.mrb[40].mxu0 %vm4037_vm3, %v4023_v9  ;;  %6922 = vmatprep.subr.bf16.mxu0 %v7315_v29 }
 0x362   :  { %6924 = vmatpush3.bf16.msra.mxu0 %v6923_v32  ;;  %6535 = vmatprep.mubr.msk.f32.mxu0 %vm7317_vm2, %v7316_v37 }
 0x363   :  { %6925 = vmatprep.subr.bf16.mxu0 %v7315_v29  ;;  %v4922_v29 = vld [vmem:[%s8837_s8] ss:$0 sm:$0xff] }
 0x366   :  { %6927 = vmatpush3.bf16.msra.mxu0 %v6926_v55 }
 0x367   :  { %6533 = vmatprep.subr.mxu0 %v7316_v37 }
 0x36a   :  { %6534 = vmatpush3.msra.mxu0 %v4349_v42 }
 0x36b   :  { %6536 = vmatmul.mubr.msk.f32.vlgmr.msra.gmra.mrb[42].mxu0 %vm4037_vm3, %v4025_v45 }
 0x426   :  { %v4180_v22 = vpop.f32.mrb[38].mxu1 }
 0x427   :  { %v6498_v58 = vpop.f32.mrb[39].mxu1 }
 0x42a   :  { %v4107_v59 = vpop.f32.mrb[38].mxu0 }
 0x42b   :  { %v4181_v60 = vadd.f32 %v4180_v22, %v4107_v59  ;;  %v6485_v62 = vpop.f32.mrb[39].mxu0 }
 0x432   :  { %v4339_v63 = vpop.f32.mrb[40].mxu1 }
 0x433   :  { %v6524_v1 = vpop.f32.mrb[41].mxu1 }
 0x434   :  { %v4259_v2 = vpop.f32.mrb[40].mxu0 }
 0x435   :  { %v4263_v3 = vadd.f32 %v4259_v2, %v4181_v60  ;;  %v6511_v43 = vpop.f32.mrb[41].mxu0 }
 0x437   :  { %v4343_v10 = vadd.f32 %v4339_v63, %v4263_v3 }
 0x43e   :  { %v4419_v11 = vpop.f32.mrb[42].mxu0 }
 0x43f   :  { %v4423_v37 = vadd.f32 %v4419_v11, %v4343_v10  ;;  %v6537_v12 = vpop.f32.mrb[43].mxu0 }
 0x441   :  { %v4431_v15 = vadd.f32 %v4922_v29, %v4423_v37 }
 0x443   :  { %4432 = vst.msk [vmem:[%s8838_s9] sm:$0xff] %vm4037_vm3, %v4431_v15 }
 0x444   :  { %4437 = vsyncpa [#allocation3], 1 }
 0x445   :  { %4438 = vsyncpa [#allocation5], 1 }

</bundles_post_ra>
